<compile_context>
chip_gen: v7x
topology: tpu7x:2x2x1
jax: 0.10.0
libtpu: 0.0.40
codegen_flags: <defaults>
</compile_context>

<pallas_src>
import functools

import numpy as np
import jax
import jax.numpy as jnp
from jax.experimental import pallas as pl
from jax.experimental.pallas import tpu as pltpu


_LANE = 128
_VMEM_LIMIT = 48 * 1024 * 1024   # < v7x's 64 MiB physical, > 32 MiB default scoped


def _round_up(x, m):
    return ((x + m - 1) // m) * m


# --------------------------------------------------------------------------
# Pallas kernel 1: front GEMMs (conv1+bn1, identity avg_conv+BN), lane-dense.
# --------------------------------------------------------------------------
def _front_kernel(xs_ref, xp_ref, w1_ref, b1_ref, dw_ref, db_ref, x1_ref, id_ref):
    # conv1 (1x1, stride 2) + folded bn1 (scale already in w1, bias add only)
    x1 = jnp.dot(xs_ref[...], w1_ref[...], preferred_element_type=jnp.float32)
    x1_ref[...] = (x1 + b1_ref[...]).astype(x1_ref.dtype)
    # identity branch: AvgPool2d(2,2) -> 1x1 conv(+bias) -> BN (all folded)
    idn = jnp.dot(xp_ref[...], dw_ref[...], preferred_element_type=jnp.float32)
    id_ref[...] = idn + db_ref[...]


def _front_gemms(xs, xp, params):
    """xs/xp: (M, Kp) bf16 row slabs -> (M, c1p) bf16 conv1 out, (M, c3p) f32 identity."""
    M, K = xs.shape
    c1p = params["w1"].shape[1]
    c3p = params["ds_w"].shape[1]
    # Large row tiles (feedback: TM 512+), pad M at most once and slice once.
    if M > 512:
        M_pad, TM = _round_up(M, 512), 512
    else:
        M_pad, TM = _round_up(M, 8), _round_up(M, 8)
    if M_pad != M:
        xs = jnp.pad(xs, ((0, M_pad - M), (0, 0)))
        xp = jnp.pad(xp, ((0, M_pad - M), (0, 0)))
    x1, idn = pl.pallas_call(
        _front_kernel,
        out_shape=(jax.ShapeDtypeStruct((M_pad, c1p), jnp.bfloat16),
                   jax.ShapeDtypeStruct((M_pad, c3p), jnp.float32)),
        grid=(M_pad // TM,),
        in_specs=[
            pl.BlockSpec((TM, K), lambda i: (i, 0)),
            pl.BlockSpec((TM, K), lambda i: (i, 0)),
            pl.BlockSpec((K, c1p), lambda i: (0, 0)),
            pl.BlockSpec((1, c1p), lambda i: (0, 0)),
            pl.BlockSpec((K, c3p), lambda i: (0, 0)),
            pl.BlockSpec((1, c3p), lambda i: (0, 0)),
        ],
        out_specs=(pl.BlockSpec((TM, c1p), lambda i: (i, 0)),
                   pl.BlockSpec((TM, c3p), lambda i: (i, 0))),
        compiler_params=pltpu.CompilerParams(
            dimension_semantics=("parallel",),
            vmem_limit_bytes=_VMEM_LIMIT),
    )(xs, xp, params["w1"], params["b1"], params["ds_w"], params["ds_b"])
    return x1[:M], idn[:M]


# --------------------------------------------------------------------------
# Pallas kernel 2: fused conv2(3x3, im2col-in-kernel)+bn2+relu, conv3+bn3+relu,
# SE layer, residual add, final ReLU.  Grid over batch (megacore parallel).
# The conv2 input is a row-flattened, zero-padded slab of width Wp = Wo+2;
# tap (di, dj) is the contiguous row window starting at L_OFF + di*Wp + dj - 1.
# Rows whose column index is 0 or Wp-1 are "wrap" garbage; they are excluded
# from the SE pool via `mask_ref` and dropped by the caller.
# --------------------------------------------------------------------------
def _tail_kernel(xf_ref, id_ref, mask_ref, w2_ref, b2_ref, w3_ref, b3_ref,
                 sw1_ref, sb1_ref, sw2_ref, sb2_ref, o_ref, *, L_OFF, Wp, inv_n):
    M = o_ref.shape[1]

    # conv2 (3x3, pad 1): fused im2col — 9 shifted taps accumulated in f32,
    # no (M, 9*C) patches tensor ever touches HBM.
    def tap(t):
        di, dj = divmod(t, 3)
        s = L_OFF + di * Wp + dj - 1
        return jnp.dot(xf_ref[0, s:s + M, :], w2_ref[t],
                       preferred_element_type=jnp.float32)

    acc = tap(0)
    for t in range(1, 9):
        acc = acc + tap(t)
    x2 = jnp.maximum(acc + b2_ref[...], 0.0)                    # folded bn2 + relu

    # conv3 (1x1) + folded bn3 + relu   (bf16 MXU path, f32 accumulate/epilogue)
    x3 = jnp.dot(x2.astype(w3_ref.dtype), w3_ref[...],
                 preferred_element_type=jnp.float32) + b3_ref[...]
    x3 = jnp.maximum(x3, 0.0)

    # SE: masked global average pool (AdaptiveAvgPool2d((1,1)) over valid rows)
    pooled = jnp.sum(x3 * mask_ref[...], axis=0, keepdims=True) * inv_n   # (1, c3p)
    h = jnp.dot(pooled.astype(sw1_ref.dtype), sw1_ref[...],
                preferred_element_type=jnp.float32) + sb1_ref[...]
    h = jnp.maximum(h, 0.0)
    z = jnp.dot(h.astype(sw2_ref.dtype), sw2_ref[...],
                preferred_element_type=jnp.float32) + sb2_ref[...]
    gate = pl.reciprocal(1.0 + jnp.exp(-z), approx=True)        # sigmoid on EUP

    # channel gate + residual + final ReLU (identity buffer is aliased to out)
    o_ref[0] = jnp.maximum(x3 * gate + id_ref[0], 0.0)


def _tail(xf, idq, mask, params, *, Wp, L_OFF, n_valid):
    B, R_in, c4p = xf.shape
    M_out = idq.shape[1]
    c2p = params["w2"].shape[2]
    c3p = params["w3"].shape[1]
    crp = params["se_w1"].shape[1]
    kern = functools.partial(_tail_kernel, L_OFF=L_OFF, Wp=Wp,
                             inv_n=1.0 / float(n_valid))
    return pl.pallas_call(
        kern,
        out_shape=jax.ShapeDtypeStruct((B, M_out, c3p), jnp.float32),
        grid=(B,),
        in_specs=[
            pl.BlockSpec((1, R_in, c4p), lambda b: (b, 0, 0)),
            pl.BlockSpec((1, M_out, c3p), lambda b: (b, 0, 0)),
            pl.BlockSpec((M_out, 1), lambda b: (0, 0)),
            pl.BlockSpec((9, c4p, c2p), lambda b: (0, 0, 0)),
            pl.BlockSpec((1, c2p), lambda b: (0, 0)),
            pl.BlockSpec((c2p, c3p), lambda b: (0, 0)),
            pl.BlockSpec((1, c3p), lambda b: (0, 0)),
            pl.BlockSpec((c3p, crp), lambda b: (0, 0)),
            pl.BlockSpec((1, crp), lambda b: (0, 0)),
            pl.BlockSpec((crp, c3p), lambda b: (0, 0)),
            pl.BlockSpec((1, c3p), lambda b: (0, 0)),
        ],
        out_specs=pl.BlockSpec((1, M_out, c3p), lambda b: (b, 0, 0)),
        input_output_aliases={1: 0},   # reuse the identity buffer for the output
        compiler_params=pltpu.CompilerParams(
            dimension_semantics=("parallel",),
            vmem_limit_bytes=_VMEM_LIMIT),
    )(xf, idq, mask, params["w2"], params["b2"], params["w3"], params["b3"],
      params["se_w1"], params["se_b1"], params["se_w2"], params["se_b2"])


# --------------------------------------------------------------------------
# Glue: composite (bilinear x2 align_corners=True upsample ∘ Haar DWT) per-axis
# operators.  Both steps are linear, so the 4x upsampled intermediate is never
# materialized.
# --------------------------------------------------------------------------
def _bilinear_matrix(out_size, in_size):
    if out_size == 1:
        src = np.zeros((1,), np.float64)
    else:
        src = np.arange(out_size) * (in_size - 1) / (out_size - 1)
    lo = np.clip(np.floor(src).astype(np.int64), 0, in_size - 1)
    hi = np.minimum(lo + 1, in_size - 1)
    frac = src - lo
    M = np.zeros((out_size, in_size), np.float64)
    M[np.arange(out_size), lo] += 1.0 - frac
    M[np.arange(out_size), hi] += frac
    return M


def _updwt_ops(n):
    """(low, high) composite operators, each (n, n): Haar-analysis ∘ bilinear-x2."""
    # TODO(synk): DWT_2D('haar') source not provided; orthonormal Haar
    # convention (1/sqrt(2) per axis, bands ordered ll,lh,hl,hh) is assumed.
    Mu = _bilinear_matrix(2 * n, n)                      # (2n, n)
    s = 1.0 / np.sqrt(2.0)
    Lo = np.zeros((n, 2 * n)); Hi = np.zeros((n, 2 * n))
    r = np.arange(n)
    Lo[r, 2 * r] = s; Lo[r, 2 * r + 1] = s
    Hi[r, 2 * r] = -s; Hi[r, 2 * r + 1] = s
    return (jnp.asarray(Lo @ Mu, jnp.float32), jnp.asarray(Hi @ Mu, jnp.float32))


# --------------------------------------------------------------------------
# Parameter initialization (deterministic, synthetic).  BN scales are folded
# into the weights; all channel dims are zero-padded to multiples of 128 so
# every kernel output is lane-dense (padding is numerically transparent).
# --------------------------------------------------------------------------
def _pad2(w, K, N):
    return jnp.pad(w, ((0, K - w.shape[0]), (0, N - w.shape[1])))


def init_params(key, in_channel, filters, eps=1e-5):
    c1, c2, c3 = filters
    assert c3 // 16 >= 1, "SE reduction=16 requires c3 >= 16"
    cr = c3 // 16
    cinp = _round_up(in_channel, _LANE)
    c1p, c2p, c3p, crp = (_round_up(c, _LANE) for c in (c1, c2, c3, cr))
    c4 = 4 * c1
    c4p = _round_up(c4, _LANE)
    ks = jax.random.split(key, 13)

    def bn(k, c):
        kk = jax.random.split(k, 4)
        gamma = jax.random.uniform(kk[0], (c,), minval=0.5, maxval=1.5)
        beta = 0.1 * jax.random.normal(kk[1], (c,))
        mean = 0.1 * jax.random.normal(kk[2], (c,))
        var = jax.random.uniform(kk[3], (c,), minval=0.5, maxval=1.5)
        scale = gamma / jnp.sqrt(var + eps)
        return scale, beta - mean * scale

    p = {}
    # conv1 (1x1, Cin->c1, no bias) + bn1 (scale folded into weight)
    w1 = 0.1 * jax.random.normal(ks[0], (in_channel, c1), jnp.float32)
    s1, b1 = bn(ks[1], c1)
    p["w1"] = _pad2(w1 * s1[None, :], cinp, c1p).astype(jnp.bfloat16)
    p["b1"] = _pad2(b1[None, :], 1, c1p)
    # conv2 (3x3, 4*c1 -> c2, pad 1, no bias) + bn2 ; stored as 9 tap matrices
    w2 = 0.1 * jax.random.normal(ks[2], (9, c4, c2), jnp.float32)
    s2, b2 = bn(ks[3], c2)
    w2 = w2 * s2[None, None, :]
    p["w2"] = jnp.pad(w2, ((0, 0), (0, c4p - c4), (0, c2p - c2))).astype(jnp.bfloat16)
    p["b2"] = _pad2(b2[None, :], 1, c2p)
    # conv3 (1x1, c2->c3, no bias) + bn3
    w3 = 0.1 * jax.random.normal(ks[4], (c2, c3), jnp.float32)
    s3, b3 = bn(ks[5], c3)
    p["w3"] = _pad2(w3 * s3[None, :], c2p, c3p).astype(jnp.bfloat16)
    p["b3"] = _pad2(b3[None, :], 1, c3p)
    # identity: avg_conv = AvgPool2d(2,2) -> Conv1x1(Cin->c3, bias=True) -> BN
    dw = 0.1 * jax.random.normal(ks[6], (in_channel, c3), jnp.float32)
    dcb = 0.1 * jax.random.normal(ks[7], (c3,), jnp.float32)
    sd, bd = bn(ks[8], c3)
    p["ds_w"] = _pad2(dw * sd[None, :], cinp, c3p).astype(jnp.bfloat16)
    p["ds_b"] = _pad2((bd + dcb * sd)[None, :], 1, c3p)
    # SE (Linear c3 -> c3//16 -> c3, both with bias)
    sw1 = 0.1 * jax.random.normal(ks[9], (c3, cr), jnp.float32)
    sb1 = 0.1 * jax.random.normal(ks[10], (cr,), jnp.float32)
    sw2 = 0.1 * jax.random.normal(ks[11], (cr, c3), jnp.float32)
    sb2 = 0.1 * jax.random.normal(ks[12], (c3,), jnp.float32)
    p["se_w1"] = _pad2(sw1, c3p, crp).astype(jnp.bfloat16)
    p["se_b1"] = _pad2(sb1[None, :], 1, crp)
    p["se_w2"] = _pad2(sw2, crp, c3p).astype(jnp.bfloat16)
    p["se_b2"] = _pad2(sb2[None, :], 1, c3p)
    return p


# --------------------------------------------------------------------------
# Bottleneck forward (stride=2 path, module default)
# --------------------------------------------------------------------------
def bottleneck_forward(x_nchw, params, *, filters, stride=2):
    assert stride == 2, "stride=2 (module default) path only"
    # TODO(synk): stride==1 path (self.conv identity branch) not implemented.
    c1, c2, c3 = filters
    B, Cin, H, W = x_nchw.shape
    Ho, Wo = H // 2, W // 2
    Wp = Wo + 2
    cinp, c1p = params["w1"].shape
    c4p = params["w2"].shape[1]
    c3p = params["w3"].shape[1]

    x = jnp.transpose(x_nchw, (0, 2, 3, 1)).astype(jnp.float32)       # NHWC

    # Cheap spatial prep (pure data movement, <= input size): stride-2 rows for
    # conv1 and 2x2 avg-pooled rows for the identity branch.
    xs = x[:, ::2, ::2, :]
    xp = x.reshape(B, Ho, 2, Wo, 2, Cin).mean(axis=(2, 4))
    pad_c = lambda a, cp: jnp.pad(a, ((0, 0),) * (a.ndim - 1) + ((0, cp - a.shape[-1]),))
    xs = pad_c(xs, cinp).reshape(B * Ho * Wo, cinp).astype(jnp.bfloat16)
    xp = pad_c(xp, cinp).reshape(B * Ho * Wo, cinp).astype(jnp.bfloat16)

    # Pallas kernel 1: conv1+bn1 and identity GEMMs (lane-dense outputs).
    x1_rows, id_rows = _front_gemms(xs, xp, params)
    x1 = x1_rows.reshape(B, Ho, Wo, c1p)[..., :c1].astype(jnp.float32)

    # Bilinear x2 (align_corners=True) upsample + Haar DWT as composite per-axis
    # operators: no (B, 2Ho, 2Wo, c1) intermediate, no strided-slice DWT.
    # TODO(synk): could be pushed inside the tail Pallas kernel as well.
    RL, RH = _updwt_ops(Ho)
    CL, CH = _updwt_ops(Wo)
    yL = jnp.einsum("ip,bpqc->biqc", RL, x1)
    yH = jnp.einsum("ip,bpqc->biqc", RH, x1)
    ll = jnp.einsum("jq,biqc->bijc", CL, yL)
    lh = jnp.einsum("jq,biqc->bijc", CL, yH)
    hl = jnp.einsum("jq,biqc->bijc", CH, yL)
    hh = jnp.einsum("jq,biqc->bijc", CH, yH)
    xd = pad_c(jnp.concatenate([ll, lh, hl, hh], axis=-1), c4p)       # (B,Ho,Wo,c4p)

    # Row-flattened, zero-padded slab consumed by the fused tail kernel.
    L_OFF = 8
    xf = jnp.pad(xd, ((0, 0), (1, 1), (1, 1), (0, 0)))                # spatial pad 1
    xf = xf.reshape(B, (Ho + 2) * Wp, c4p)
    R_in = _round_up(L_OFF + (Ho + 2) * Wp + 1, 8)
    xf = jnp.pad(xf, ((0, 0), (L_OFF, R_in - L_OFF - (Ho + 2) * Wp), (0, 0)))
    xf = xf.astype(jnp.bfloat16)

    # Identity laid out on the same (Ho, Wp) padded-width row grid.
    idq = id_rows.reshape(B, Ho, Wo, c3p)
    idq = jnp.pad(idq, ((0, 0), (0, 0), (1, 1), (0, 0))).reshape(B, Ho * Wp, c3p)

    # Valid-row mask for the SE global pool (excludes the wrap/garbage columns).
    col = np.arange(Ho * Wp) % Wp
    mask = jnp.asarray(((col >= 1) & (col <= Wo)).astype(np.float32)).reshape(Ho * Wp, 1)

    # Pallas kernel 2: conv2(+fused im2col)+bn2+relu, conv3+bn3+relu, SE,
    # residual add, final ReLU.
    y = _tail(xf, idq, mask, params, Wp=Wp, L_OFF=L_OFF, n_valid=Ho * Wo)

    y = y.reshape(B, Ho, Wp, c3p)[:, :, 1:1 + Wo, :c3]
    return jnp.transpose(y, (0, 3, 1, 2))                             # NCHW out


if __name__ == "__main__":
    key = jax.random.PRNGKey(0)
    B, Cin, H, W = 2, 64, 16, 16
    filters = (32, 128, 128)        # (c1, c2, c3); 4*c1 and c2/c3 are lane-dense
    kx, kp = jax.random.split(key)
    x = jax.random.normal(kx, (B, Cin, H, W), dtype=jnp.float32)
    params = init_params(kp, Cin, filters)

    fwd = jax.jit(functools.partial(bottleneck_forward, filters=filters, stride=2))
    y = fwd(x, params)
    jax.block_until_ready(y)
    assert y.shape == (B, filters[2], H // 2, W // 2), y.shape
    assert bool(jnp.all(jnp.isfinite(y)))
    assert bool(jnp.all(y >= 0.0))   # final ReLU
    print("KERNEL_OK")
</pallas_src>

<mosaic_0001>
module attributes {stable_mosaic.version = 11 : i64} {
  func.func @_front_kernel(%arg0: i32, %arg1: memref<128x128xbf16, #tpu.memory_space<vmem>>, %arg2: memref<128x128xbf16, #tpu.memory_space<vmem>>, %arg3: memref<128x128xbf16, #tpu.memory_space<vmem>>, %arg4: memref<1x128xf32, #tpu.memory_space<vmem>>, %arg5: memref<128x128xbf16, #tpu.memory_space<vmem>>, %arg6: memref<1x128xf32, #tpu.memory_space<vmem>>, %arg7: memref<128x128xbf16, #tpu.memory_space<vmem>>, %arg8: memref<128x128xf32, #tpu.memory_space<vmem>>) attributes {dimension_semantics = [#tpu.dimension_semantics<parallel>], iteration_bounds = array<i64: 1>, scalar_prefetch = 0 : i64, scratch_operands = 0 : i64, tpu.core_type = #tpu.core_type<tc>, window_params = [{transform_indices = @transform_0, window_bounds = array<i64: 128, 128>}, {transform_indices = @transform_1, window_bounds = array<i64: 128, 128>}, {pipeline_mode = #tpu.pipeline_mode<synchronous>, transform_indices = @transform_2, window_bounds = array<i64: 128, 128>}, {pipeline_mode = #tpu.pipeline_mode<synchronous>, transform_indices = @transform_3, window_bounds = array<i64: 1, 128>}, {pipeline_mode = #tpu.pipeline_mode<synchronous>, transform_indices = @transform_4, window_bounds = array<i64: 128, 128>}, {pipeline_mode = #tpu.pipeline_mode<synchronous>, transform_indices = @transform_5, window_bounds = array<i64: 1, 128>}, {transform_indices = @transform_6, window_bounds = array<i64: 128, 128>}, {transform_indices = @transform_7, window_bounds = array<i64: 128, 128>}]} {
    %c0 = arith.constant 0 : index
    %c0_0 = arith.constant 0 : index
    %0 = vector.load %arg1[%c0, %c0_0] : memref<128x128xbf16, #tpu.memory_space<vmem>>, vector<128x128xbf16>
    %c0_1 = arith.constant 0 : index
    %c0_2 = arith.constant 0 : index
    %1 = vector.load %arg3[%c0_1, %c0_2] : memref<128x128xbf16, #tpu.memory_space<vmem>>, vector<128x128xbf16>
    %cst = arith.constant dense<0.000000e+00> : vector<128x128xf32>
    %2 = tpu.matmul %0, %1, %cst {dimension_numbers = #tpu.dot_dimension_numbers<[1], [0], [0], [1], [0, 0, 1, 1], [], []>} : vector<128x128xbf16>, vector<128x128xbf16>, vector<128x128xf32> -> vector<128x128xf32>
    %c0_3 = arith.constant 0 : index
    %c0_4 = arith.constant 0 : index
    %3 = vector.load %arg4[%c0_3, %c0_4] : memref<1x128xf32, #tpu.memory_space<vmem>>, vector<1x128xf32>
    %4 = vector.broadcast %3 : vector<1x128xf32> to vector<128x128xf32>
    %5 = arith.addf %2, %4 : vector<128x128xf32>
    %6 = arith.truncf %5 : vector<128x128xf32> to vector<128x128xbf16>
    %c0_5 = arith.constant 0 : index
    %c0_6 = arith.constant 0 : index
    %7 = vector.load %arg7[%c0_5, %c0_6] : memref<128x128xbf16, #tpu.memory_space<vmem>>, vector<128x128xbf16>
    tpu.vector_store %arg7[%c0_5, %c0_6], %6 {strides = array<i32>} : memref<128x128xbf16, #tpu.memory_space<vmem>>, vector<128x128xbf16>,
    %c0_7 = arith.constant 0 : index
    %c0_8 = arith.constant 0 : index
    %8 = vector.load %arg2[%c0_7, %c0_8] : memref<128x128xbf16, #tpu.memory_space<vmem>>, vector<128x128xbf16>
    %c0_9 = arith.constant 0 : index
    %c0_10 = arith.constant 0 : index
    %9 = vector.load %arg5[%c0_9, %c0_10] : memref<128x128xbf16, #tpu.memory_space<vmem>>, vector<128x128xbf16>
    %cst_11 = arith.constant dense<0.000000e+00> : vector<128x128xf32>
    %10 = tpu.matmul %8, %9, %cst_11 {dimension_numbers = #tpu.dot_dimension_numbers<[1], [0], [0], [1], [0, 0, 1, 1], [], []>} : vector<128x128xbf16>, vector<128x128xbf16>, vector<128x128xf32> -> vector<128x128xf32>
    %c0_12 = arith.constant 0 : index
    %c0_13 = arith.constant 0 : index
    %11 = vector.load %arg6[%c0_12, %c0_13] : memref<1x128xf32, #tpu.memory_space<vmem>>, vector<1x128xf32>
    %12 = vector.broadcast %11 : vector<1x128xf32> to vector<128x128xf32>
    %13 = arith.addf %10, %12 : vector<128x128xf32>
    %c0_14 = arith.constant 0 : index
    %c0_15 = arith.constant 0 : index
    %14 = vector.load %arg8[%c0_14, %c0_15] : memref<128x128xf32, #tpu.memory_space<vmem>>, vector<128x128xf32>
    tpu.vector_store %arg8[%c0_14, %c0_15], %13 {strides = array<i32>} : memref<128x128xf32, #tpu.memory_space<vmem>>, vector<128x128xf32>,
    return
  }
  func.func @transform_0(%arg0: i32) -> (i32, i32) {
    %c0_i32 = arith.constant 0 : i32
    %c0_i32_0 = arith.constant 0 : i32
    return %arg0, %c0_i32 : i32, i32
  }
  func.func @transform_1(%arg0: i32) -> (i32, i32) {
    %c0_i32 = arith.constant 0 : i32
    %c0_i32_0 = arith.constant 0 : i32
    return %arg0, %c0_i32 : i32, i32
  }
  func.func @transform_2(%arg0: i32) -> (i32, i32) {
    %c0_i32 = arith.constant 0 : i32
    %c0_i32_0 = arith.constant 0 : i32
    %c0_i32_1 = arith.constant 0 : i32
    return %c0_i32, %c0_i32_0 : i32, i32
  }
  func.func @transform_3(%arg0: i32) -> (i32, i32) {
    %c0_i32 = arith.constant 0 : i32
    %c0_i32_0 = arith.constant 0 : i32
    %c0_i32_1 = arith.constant 0 : i32
    return %c0_i32, %c0_i32_0 : i32, i32
  }
  func.func @transform_4(%arg0: i32) -> (i32, i32) {
    %c0_i32 = arith.constant 0 : i32
    %c0_i32_0 = arith.constant 0 : i32
    %c0_i32_1 = arith.constant 0 : i32
    return %c0_i32, %c0_i32_0 : i32, i32
  }
  func.func @transform_5(%arg0: i32) -> (i32, i32) {
    %c0_i32 = arith.constant 0 : i32
    %c0_i32_0 = arith.constant 0 : i32
    %c0_i32_1 = arith.constant 0 : i32
    return %c0_i32, %c0_i32_0 : i32, i32
  }
  func.func @transform_6(%arg0: i32) -> (i32, i32) {
    %c0_i32 = arith.constant 0 : i32
    %c0_i32_0 = arith.constant 0 : i32
    return %arg0, %c0_i32 : i32, i32
  }
  func.func @transform_7(%arg0: i32) -> (i32, i32) {
    %c0_i32 = arith.constant 0 : i32
    %c0_i32_0 = arith.constant 0 : i32
    return %arg0, %c0_i32 : i32, i32
  }
}

module attributes {stable_mosaic.version = 11 : i64} {
  func.func @_tail_kernel(%arg0: i32, %arg1: memref<1x112x128xbf16, #tpu.memory_space<vmem>>, %arg2: memref<1x80x128xf32, #tpu.memory_space<vmem>>, %arg3: memref<80x1xf32, #tpu.memory_space<vmem>>, %arg4: memref<9x128x128xbf16, #tpu.memory_space<vmem>>, %arg5: memref<1x128xf32, #tpu.memory_space<vmem>>, %arg6: memref<128x128xbf16, #tpu.memory_space<vmem>>, %arg7: memref<1x128xf32, #tpu.memory_space<vmem>>, %arg8: memref<128x128xbf16, #tpu.memory_space<vmem>>, %arg9: memref<1x128xf32, #tpu.memory_space<vmem>>, %arg10: memref<128x128xbf16, #tpu.memory_space<vmem>>, %arg11: memref<1x128xf32, #tpu.memory_space<vmem>>, %arg12: memref<1x80x128xf32, #tpu.memory_space<vmem>>) attributes {dimension_semantics = [#tpu.dimension_semantics<parallel>], iteration_bounds = array<i64: 2>, scalar_prefetch = 0 : i64, scratch_operands = 0 : i64, tpu.core_type = #tpu.core_type<tc>, window_params = [{transform_indices = @transform_0, window_bounds = array<i64: 1, 112, 128>}, {transform_indices = @transform_1, window_bounds = array<i64: 1, 80, 128>}, {pipeline_mode = #tpu.pipeline_mode<synchronous>, transform_indices = @transform_2, window_bounds = array<i64: 80, 1>}, {pipeline_mode = #tpu.pipeline_mode<synchronous>, transform_indices = @transform_3, window_bounds = array<i64: 9, 128, 128>}, {pipeline_mode = #tpu.pipeline_mode<synchronous>, transform_indices = @transform_4, window_bounds = array<i64: 1, 128>}, {pipeline_mode = #tpu.pipeline_mode<synchronous>, transform_indices = @transform_5, window_bounds = array<i64: 128, 128>}, {pipeline_mode = #tpu.pipeline_mode<synchronous>, transform_indices = @transform_6, window_bounds = array<i64: 1, 128>}, {pipeline_mode = #tpu.pipeline_mode<synchronous>, transform_indices = @transform_7, window_bounds = array<i64: 128, 128>}, {pipeline_mode = #tpu.pipeline_mode<synchronous>, transform_indices = @transform_8, window_bounds = array<i64: 1, 128>}, {pipeline_mode = #tpu.pipeline_mode<synchronous>, transform_indices = @transform_9, window_bounds = array<i64: 128, 128>}, {pipeline_mode = #tpu.pipeline_mode<synchronous>, transform_indices = @transform_10, window_bounds = array<i64: 1, 128>}, {transform_indices = @transform_11, window_bounds = array<i64: 1, 80, 128>}]} {
    %c0 = arith.constant 0 : index
    %c7 = arith.constant 7 : index
    %c0_0 = arith.constant 0 : index
    %0 = vector.load %arg1[%c0, %c7, %c0_0] : memref<1x112x128xbf16, #tpu.memory_space<vmem>>, vector<1x80x128xbf16>
    %1 = vector.shape_cast %0 : vector<1x80x128xbf16> to vector<80x128xbf16>
    %c0_1 = arith.constant 0 : index
    %c0_2 = arith.constant 0 : index
    %c0_3 = arith.constant 0 : index
    %2 = vector.load %arg4[%c0_1, %c0_2, %c0_3] : memref<9x128x128xbf16, #tpu.memory_space<vmem>>, vector<1x128x128xbf16>
    %3 = vector.shape_cast %2 : vector<1x128x128xbf16> to vector<128x128xbf16>
    %cst = arith.constant dense<0.000000e+00> : vector<80x128xf32>
    %4 = tpu.matmul %1, %3, %cst {dimension_numbers = #tpu.dot_dimension_numbers<[1], [0], [0], [1], [0, 0, 1, 1], [], []>} : vector<80x128xbf16>, vector<128x128xbf16>, vector<80x128xf32> -> vector<80x128xf32>
    %c0_4 = arith.constant 0 : index
    %c8 = arith.constant 8 : index
    %c0_5 = arith.constant 0 : index
    %5 = vector.load %arg1[%c0_4, %c8, %c0_5] : memref<1x112x128xbf16, #tpu.memory_space<vmem>>, vector<1x80x128xbf16>
    %6 = vector.shape_cast %5 : vector<1x80x128xbf16> to vector<80x128xbf16>
    %c1 = arith.constant 1 : index
    %c0_6 = arith.constant 0 : index
    %c0_7 = arith.constant 0 : index
    %7 = vector.load %arg4[%c1, %c0_6, %c0_7] : memref<9x128x128xbf16, #tpu.memory_space<vmem>>, vector<1x128x128xbf16>
    %8 = vector.shape_cast %7 : vector<1x128x128xbf16> to vector<128x128xbf16>
    %cst_8 = arith.constant dense<0.000000e+00> : vector<80x128xf32>
    %9 = tpu.matmul %6, %8, %cst_8 {dimension_numbers = #tpu.dot_dimension_numbers<[1], [0], [0], [1], [0, 0, 1, 1], [], []>} : vector<80x128xbf16>, vector<128x128xbf16>, vector<80x128xf32> -> vector<80x128xf32>
    %10 = arith.addf %4, %9 : vector<80x128xf32>
    %c0_9 = arith.constant 0 : index
    %c9 = arith.constant 9 : index
    %c0_10 = arith.constant 0 : index
    %11 = vector.load %arg1[%c0_9, %c9, %c0_10] : memref<1x112x128xbf16, #tpu.memory_space<vmem>>, vector<1x80x128xbf16>
    %12 = vector.shape_cast %11 : vector<1x80x128xbf16> to vector<80x128xbf16>
    %c2 = arith.constant 2 : index
    %c0_11 = arith.constant 0 : index
    %c0_12 = arith.constant 0 : index
    %13 = vector.load %arg4[%c2, %c0_11, %c0_12] : memref<9x128x128xbf16, #tpu.memory_space<vmem>>, vector<1x128x128xbf16>
    %14 = vector.shape_cast %13 : vector<1x128x128xbf16> to vector<128x128xbf16>
    %cst_13 = arith.constant dense<0.000000e+00> : vector<80x128xf32>
    %15 = tpu.matmul %12, %14, %cst_13 {dimension_numbers = #tpu.dot_dimension_numbers<[1], [0], [0], [1], [0, 0, 1, 1], [], []>} : vector<80x128xbf16>, vector<128x128xbf16>, vector<80x128xf32> -> vector<80x128xf32>
    %16 = arith.addf %10, %15 : vector<80x128xf32>
    %c0_14 = arith.constant 0 : index
    %c17 = arith.constant 17 : index
    %c0_15 = arith.constant 0 : index
    %17 = vector.load %arg1[%c0_14, %c17, %c0_15] : memref<1x112x128xbf16, #tpu.memory_space<vmem>>, vector<1x80x128xbf16>
    %18 = vector.shape_cast %17 : vector<1x80x128xbf16> to vector<80x128xbf16>
    %c3 = arith.constant 3 : index
    %c0_16 = arith.constant 0 : index
    %c0_17 = arith.constant 0 : index
    %19 = vector.load %arg4[%c3, %c0_16, %c0_17] : memref<9x128x128xbf16, #tpu.memory_space<vmem>>, vector<1x128x128xbf16>
    %20 = vector.shape_cast %19 : vector<1x128x128xbf16> to vector<128x128xbf16>
    %cst_18 = arith.constant dense<0.000000e+00> : vector<80x128xf32>
    %21 = tpu.matmul %18, %20, %cst_18 {dimension_numbers = #tpu.dot_dimension_numbers<[1], [0], [0], [1], [0, 0, 1, 1], [], []>} : vector<80x128xbf16>, vector<128x128xbf16>, vector<80x128xf32> -> vector<80x128xf32>
    %22 = arith.addf %16, %21 : vector<80x128xf32>
    %c0_19 = arith.constant 0 : index
    %c18 = arith.constant 18 : index
    %c0_20 = arith.constant 0 : index
    %23 = vector.load %arg1[%c0_19, %c18, %c0_20] : memref<1x112x128xbf16, #tpu.memory_space<vmem>>, vector<1x80x128xbf16>
    %24 = vector.shape_cast %23 : vector<1x80x128xbf16> to vector<80x128xbf16>
    %c4 = arith.constant 4 : index
    %c0_21 = arith.constant 0 : index
    %c0_22 = arith.constant 0 : index
    %25 = vector.load %arg4[%c4, %c0_21, %c0_22] : memref<9x128x128xbf16, #tpu.memory_space<vmem>>, vector<1x128x128xbf16>
    %26 = vector.shape_cast %25 : vector<1x128x128xbf16> to vector<128x128xbf16>
    %cst_23 = arith.constant dense<0.000000e+00> : vector<80x128xf32>
    %27 = tpu.matmul %24, %26, %cst_23 {dimension_numbers = #tpu.dot_dimension_numbers<[1], [0], [0], [1], [0, 0, 1, 1], [], []>} : vector<80x128xbf16>, vector<128x128xbf16>, vector<80x128xf32> -> vector<80x128xf32>
    %28 = arith.addf %22, %27 : vector<80x128xf32>
    %c0_24 = arith.constant 0 : index
    %c19 = arith.constant 19 : index
    %c0_25 = arith.constant 0 : index
    %29 = vector.load %arg1[%c0_24, %c19, %c0_25] : memref<1x112x128xbf16, #tpu.memory_space<vmem>>, vector<1x80x128xbf16>
    %30 = vector.shape_cast %29 : vector<1x80x128xbf16> to vector<80x128xbf16>
    %c5 = arith.constant 5 : index
    %c0_26 = arith.constant 0 : index
    %c0_27 = arith.constant 0 : index
    %31 = vector.load %arg4[%c5, %c0_26, %c0_27] : memref<9x128x128xbf16, #tpu.memory_space<vmem>>, vector<1x128x128xbf16>
    %32 = vector.shape_cast %31 : vector<1x128x128xbf16> to vector<128x128xbf16>
    %cst_28 = arith.constant dense<0.000000e+00> : vector<80x128xf32>
    %33 = tpu.matmul %30, %32, %cst_28 {dimension_numbers = #tpu.dot_dimension_numbers<[1], [0], [0], [1], [0, 0, 1, 1], [], []>} : vector<80x128xbf16>, vector<128x128xbf16>, vector<80x128xf32> -> vector<80x128xf32>
    %34 = arith.addf %28, %33 : vector<80x128xf32>
    %c0_29 = arith.constant 0 : index
    %c27 = arith.constant 27 : index
    %c0_30 = arith.constant 0 : index
    %35 = vector.load %arg1[%c0_29, %c27, %c0_30] : memref<1x112x128xbf16, #tpu.memory_space<vmem>>, vector<1x80x128xbf16>
    %36 = vector.shape_cast %35 : vector<1x80x128xbf16> to vector<80x128xbf16>
    %c6 = arith.constant 6 : index
    %c0_31 = arith.constant 0 : index
    %c0_32 = arith.constant 0 : index
    %37 = vector.load %arg4[%c6, %c0_31, %c0_32] : memref<9x128x128xbf16, #tpu.memory_space<vmem>>, vector<1x128x128xbf16>
    %38 = vector.shape_cast %37 : vector<1x128x128xbf16> to vector<128x128xbf16>
    %cst_33 = arith.constant dense<0.000000e+00> : vector<80x128xf32>
    %39 = tpu.matmul %36, %38, %cst_33 {dimension_numbers = #tpu.dot_dimension_numbers<[1], [0], [0], [1], [0, 0, 1, 1], [], []>} : vector<80x128xbf16>, vector<128x128xbf16>, vector<80x128xf32> -> vector<80x128xf32>
    %40 = arith.addf %34, %39 : vector<80x128xf32>
    %c0_34 = arith.constant 0 : index
    %c28 = arith.constant 28 : index
    %c0_35 = arith.constant 0 : index
    %41 = vector.load %arg1[%c0_34, %c28, %c0_35] : memref<1x112x128xbf16, #tpu.memory_space<vmem>>, vector<1x80x128xbf16>
    %42 = vector.shape_cast %41 : vector<1x80x128xbf16> to vector<80x128xbf16>
    %c7_36 = arith.constant 7 : index
    %c0_37 = arith.constant 0 : index
    %c0_38 = arith.constant 0 : index
    %43 = vector.load %arg4[%c7_36, %c0_37, %c0_38] : memref<9x128x128xbf16, #tpu.memory_space<vmem>>, vector<1x128x128xbf16>
    %44 = vector.shape_cast %43 : vector<1x128x128xbf16> to vector<128x128xbf16>
    %cst_39 = arith.constant dense<0.000000e+00> : vector<80x128xf32>
    %45 = tpu.matmul %42, %44, %cst_39 {dimension_numbers = #tpu.dot_dimension_numbers<[1], [0], [0], [1], [0, 0, 1, 1], [], []>} : vector<80x128xbf16>, vector<128x128xbf16>, vector<80x128xf32> -> vector<80x128xf32>
    %46 = arith.addf %40, %45 : vector<80x128xf32>
    %c0_40 = arith.constant 0 : index
    %c29 = arith.constant 29 : index
    %c0_41 = arith.constant 0 : index
    %47 = vector.load %arg1[%c0_40, %c29, %c0_41] : memref<1x112x128xbf16, #tpu.memory_space<vmem>>, vector<1x80x128xbf16>
    %48 = vector.shape_cast %47 : vector<1x80x128xbf16> to vector<80x128xbf16>
    %c8_42 = arith.constant 8 : index
    %c0_43 = arith.constant 0 : index
    %c0_44 = arith.constant 0 : index
    %49 = vector.load %arg4[%c8_42, %c0_43, %c0_44] : memref<9x128x128xbf16, #tpu.memory_space<vmem>>, vector<1x128x128xbf16>
    %50 = vector.shape_cast %49 : vector<1x128x128xbf16> to vector<128x128xbf16>
    %cst_45 = arith.constant dense<0.000000e+00> : vector<80x128xf32>
    %51 = tpu.matmul %48, %50, %cst_45 {dimension_numbers = #tpu.dot_dimension_numbers<[1], [0], [0], [1], [0, 0, 1, 1], [], []>} : vector<80x128xbf16>, vector<128x128xbf16>, vector<80x128xf32> -> vector<80x128xf32>
    %52 = arith.addf %46, %51 : vector<80x128xf32>
    %c0_46 = arith.constant 0 : index
    %c0_47 = arith.constant 0 : index
    %53 = vector.load %arg5[%c0_46, %c0_47] : memref<1x128xf32, #tpu.memory_space<vmem>>, vector<1x128xf32>
    %54 = vector.broadcast %53 : vector<1x128xf32> to vector<80x128xf32>
    %55 = arith.addf %52, %54 : vector<80x128xf32>
    %cst_48 = arith.constant 0.000000e+00 : f32
    %56 = vector.broadcast %cst_48 : f32 to vector<80x128xf32>
    %57 = arith.maximumf %55, %56 : vector<80x128xf32>
    %58 = arith.truncf %57 : vector<80x128xf32> to vector<80x128xbf16>
    %c0_49 = arith.constant 0 : index
    %c0_50 = arith.constant 0 : index
    %59 = vector.load %arg6[%c0_49, %c0_50] : memref<128x128xbf16, #tpu.memory_space<vmem>>, vector<128x128xbf16>
    %cst_51 = arith.constant dense<0.000000e+00> : vector<80x128xf32>
    %60 = tpu.matmul %58, %59, %cst_51 {dimension_numbers = #tpu.dot_dimension_numbers<[1], [0], [0], [1], [0, 0, 1, 1], [], []>} : vector<80x128xbf16>, vector<128x128xbf16>, vector<80x128xf32> -> vector<80x128xf32>
    %c0_52 = arith.constant 0 : index
    %c0_53 = arith.constant 0 : index
    %61 = vector.load %arg7[%c0_52, %c0_53] : memref<1x128xf32, #tpu.memory_space<vmem>>, vector<1x128xf32>
    %62 = vector.broadcast %61 : vector<1x128xf32> to vector<80x128xf32>
    %63 = arith.addf %60, %62 : vector<80x128xf32>
    %cst_54 = arith.constant 0.000000e+00 : f32
    %64 = vector.broadcast %cst_54 : f32 to vector<80x128xf32>
    %65 = arith.maximumf %63, %64 : vector<80x128xf32>
    %c0_55 = arith.constant 0 : index
    %c0_56 = arith.constant 0 : index
    %66 = vector.load %arg3[%c0_55, %c0_56] : memref<80x1xf32, #tpu.memory_space<vmem>>, vector<80x1xf32>
    %67 = vector.broadcast %66 : vector<80x1xf32> to vector<80x128xf32>
    %68 = arith.mulf %65, %67 : vector<80x128xf32>
    %cst_57 = arith.constant dense<0.000000e+00> : vector<128xf32>
    %69 = vector.multi_reduction <add>, %68, %cst_57 [0] : vector<80x128xf32> to vector<128xf32>
    %70 = vector.shape_cast %69 : vector<128xf32> to vector<1x128xf32>
    %cst_58 = arith.constant 1.562500e-02 : f32
    %71 = vector.broadcast %cst_58 : f32 to vector<1x128xf32>
    %72 = arith.mulf %70, %71 : vector<1x128xf32>
    %73 = arith.truncf %72 : vector<1x128xf32> to vector<1x128xbf16>
    %c0_59 = arith.constant 0 : index
    %c0_60 = arith.constant 0 : index
    %74 = vector.load %arg8[%c0_59, %c0_60] : memref<128x128xbf16, #tpu.memory_space<vmem>>, vector<128x128xbf16>
    %cst_61 = arith.constant dense<0.000000e+00> : vector<1x128xf32>
    %75 = tpu.matmul %73, %74, %cst_61 {dimension_numbers = #tpu.dot_dimension_numbers<[1], [0], [0], [1], [0, 0, 1, 1], [], []>} : vector<1x128xbf16>, vector<128x128xbf16>, vector<1x128xf32> -> vector<1x128xf32>
    %c0_62 = arith.constant 0 : index
    %c0_63 = arith.constant 0 : index
    %76 = vector.load %arg9[%c0_62, %c0_63] : memref<1x128xf32, #tpu.memory_space<vmem>>, vector<1x128xf32>
    %77 = arith.addf %75, %76 : vector<1x128xf32>
    %cst_64 = arith.constant 0.000000e+00 : f32
    %78 = vector.broadcast %cst_64 : f32 to vector<1x128xf32>
    %79 = arith.maximumf %77, %78 : vector<1x128xf32>
    %80 = arith.truncf %79 : vector<1x128xf32> to vector<1x128xbf16>
    %c0_65 = arith.constant 0 : index
    %c0_66 = arith.constant 0 : index
    %81 = vector.load %arg10[%c0_65, %c0_66] : memref<128x128xbf16, #tpu.memory_space<vmem>>, vector<128x128xbf16>
    %cst_67 = arith.constant dense<0.000000e+00> : vector<1x128xf32>
    %82 = tpu.matmul %80, %81, %cst_67 {dimension_numbers = #tpu.dot_dimension_numbers<[1], [0], [0], [1], [0, 0, 1, 1], [], []>} : vector<1x128xbf16>, vector<128x128xbf16>, vector<1x128xf32> -> vector<1x128xf32>
    %c0_68 = arith.constant 0 : index
    %c0_69 = arith.constant 0 : index
    %83 = vector.load %arg11[%c0_68, %c0_69] : memref<1x128xf32, #tpu.memory_space<vmem>>, vector<1x128xf32>
    %84 = arith.addf %82, %83 : vector<1x128xf32>
    %cst_70 = arith.constant 0.000000e+00 : f32
    %85 = vector.broadcast %cst_70 : f32 to vector<1x128xf32>
    %86 = arith.subf %85, %84 : vector<1x128xf32>
    %87 = math.exp %86 : vector<1x128xf32>
    %cst_71 = arith.constant 1.000000e+00 : f32
    %88 = vector.broadcast %cst_71 : f32 to vector<1x128xf32>
    %89 = arith.addf %88, %87 : vector<1x128xf32>
    %90 = tpu.reciprocal %89 {approx = true} : vector<1x128xf32> -> vector<1x128xf32>
    %91 = vector.broadcast %90 : vector<1x128xf32> to vector<80x128xf32>
    %92 = arith.mulf %65, %91 : vector<80x128xf32>
    %c0_72 = arith.constant 0 : index
    %c0_73 = arith.constant 0 : index
    %c0_74 = arith.constant 0 : index
    %93 = vector.load %arg2[%c0_72, %c0_73, %c0_74] : memref<1x80x128xf32, #tpu.memory_space<vmem>>, vector<1x80x128xf32>
    %94 = vector.shape_cast %93 : vector<1x80x128xf32> to vector<80x128xf32>
    %95 = arith.addf %92, %94 : vector<80x128xf32>
    %cst_75 = arith.constant 0.000000e+00 : f32
    %96 = vector.broadcast %cst_75 : f32 to vector<80x128xf32>
    %97 = arith.maximumf %95, %96 : vector<80x128xf32>
    %c0_76 = arith.constant 0 : index
    %c0_77 = arith.constant 0 : index
    %c0_78 = arith.constant 0 : index
    %98 = vector.load %arg12[%c0_76, %c0_77, %c0_78] : memref<1x80x128xf32, #tpu.memory_space<vmem>>, vector<1x80x128xf32>
    %99 = vector.shape_cast %98 : vector<1x80x128xf32> to vector<80x128xf32>
    %100 = vector.shape_cast %97 : vector<80x128xf32> to vector<1x80x128xf32>
    tpu.vector_store %arg12[%c0_76, %c0_77, %c0_78], %100 {strides = array<i32>} : memref<1x80x128xf32, #tpu.memory_space<vmem>>, vector<1x80x128xf32>,
    return
  }
  func.func @transform_0(%arg0: i32) -> (i32, i32, i32) {
    %c0_i32 = arith.constant 0 : i32
    %c0_i32_0 = arith.constant 0 : i32
    %c0_i32_1 = arith.constant 0 : i32
    return %arg0, %c0_i32, %c0_i32_0 : i32, i32, i32
  }
  func.func @transform_1(%arg0: i32) -> (i32, i32, i32) {
    %c0_i32 = arith.constant 0 : i32
    %c0_i32_0 = arith.constant 0 : i32
    %c0_i32_1 = arith.constant 0 : i32
    return %arg0, %c0_i32, %c0_i32_0 : i32, i32, i32
  }
  func.func @transform_2(%arg0: i32) -> (i32, i32) {
    %c0_i32 = arith.constant 0 : i32
    %c0_i32_0 = arith.constant 0 : i32
    %c0_i32_1 = arith.constant 0 : i32
    return %c0_i32, %c0_i32_0 : i32, i32
  }
  func.func @transform_3(%arg0: i32) -> (i32, i32, i32) {
    %c0_i32 = arith.constant 0 : i32
    %c0_i32_0 = arith.constant 0 : i32
    %c0_i32_1 = arith.constant 0 : i32
    %c0_i32_2 = arith.constant 0 : i32
    return %c0_i32, %c0_i32_0, %c0_i32_1 : i32, i32, i32
  }
  func.func @transform_4(%arg0: i32) -> (i32, i32) {
    %c0_i32 = arith.constant 0 : i32
    %c0_i32_0 = arith.constant 0 : i32
    %c0_i32_1 = arith.constant 0 : i32
    return %c0_i32, %c0_i32_0 : i32, i32
  }
  func.func @transform_5(%arg0: i32) -> (i32, i32) {
    %c0_i32 = arith.constant 0 : i32
    %c0_i32_0 = arith.constant 0 : i32
    %c0_i32_1 = arith.constant 0 : i32
    return %c0_i32, %c0_i32_0 : i32, i32
  }
  func.func @transform_6(%arg0: i32) -> (i32, i32) {
    %c0_i32 = arith.constant 0 : i32
    %c0_i32_0 = arith.constant 0 : i32
    %c0_i32_1 = arith.constant 0 : i32
    return %c0_i32, %c0_i32_0 : i32, i32
  }
  func.func @transform_7(%arg0: i32) -> (i32, i32) {
    %c0_i32 = arith.constant 0 : i32
    %c0_i32_0 = arith.constant 0 : i32
    %c0_i32_1 = arith.constant 0 : i32
    return %c0_i32, %c0_i32_0 : i32, i32
  }
  func.func @transform_8(%arg0: i32) -> (i32, i32) {
    %c0_i32 = arith.constant 0 : i32
    %c0_i32_0 = arith.constant 0 : i32
    %c0_i32_1 = arith.constant 0 : i32
    return %c0_i32, %c0_i32_0 : i32, i32
  }
  func.func @transform_9(%arg0: i32) -> (i32, i32) {
    %c0_i32 = arith.constant 0 : i32
    %c0_i32_0 = arith.constant 0 : i32
    %c0_i32_1 = arith.constant 0 : i32
    return %c0_i32, %c0_i32_0 : i32, i32
  }
  func.func @transform_10(%arg0: i32) -> (i32, i32) {
    %c0_i32 = arith.constant 0 : i32
    %c0_i32_0 = arith.constant 0 : i32
    %c0_i32_1 = arith.constant 0 : i32
    return %c0_i32, %c0_i32_0 : i32, i32
  }
  func.func @transform_11(%arg0: i32) -> (i32, i32, i32) {
    %c0_i32 = arith.constant 0 : i32
    %c0_i32_0 = arith.constant 0 : i32
    %c0_i32_1 = arith.constant 0 : i32
    return %arg0, %c0_i32, %c0_i32_0 : i32, i32, i32
  }
}

</mosaic_0001>

<bundles_post_ra>
// kernel: bottleneck_forward.2
= control target key start
LH: loop header
LB: loop body
LE: loop exit
PB: predicated region body
PF: predicated region fallthrough
CT: control target
= control target key end

     0   :  { %s1085_s2 = inlined_call_operand.vmem [shape: bf16[128,128], index: 2, kind: input, shape index: {}]   ;;  %s1086_s4 = inlined_call_operand.vmem [shape: bf16[128,128], index: 4, kind: input, shape index: {}]   ;;  %s1087_s0 = inlined_call_operand.vmem [shape: bf16[128,128], index: 0, kind: input, shape index: {}]   ;;  %s1088_s1 = inlined_call_operand.vmem [shape: bf16[128,128], index: 1, kind: input, shape index: {}]   ;;  %s1089_s5 = inlined_call_operand.vmem [shape: f32[1,128], index: 5, kind: input, shape index: {}]   ;;  %s1090_s3 = inlined_call_operand.vmem [shape: f32[1,128], index: 3, kind: input, shape index: {}]   ;;  %s1091_s7 = inlined_call_operand.vmem [shape: f32[128,128], index: 7, kind: output, shape index: {1}]   ;;  %s1092_s6 = inlined_call_operand.vmem [shape: bf16[128,128], index: 6, kind: output, shape index: {0}]  }
   0x1   :  { %v803_v0 = vld [vmem:[%s1085_s2] sm:$0xff]   ;;  %v805_v2 = vld [vmem:[%s1085_s2 + $0x8] sm:$0xff]   ;;  %v807_v4 = vld [vmem:[%s1085_s2 + $0x10] sm:$0xff]  }
   0x2   :  { %v804_v1 = vld [vmem:[%s1086_s4] sm:$0xff]   ;;  %739 = vmatprep.subr.bf16.mxu0 %v803_v0  ;;  %v806_v3 = vld [vmem:[%s1086_s4 + $0x8] sm:$0xff]   ;;  %v808_v5 = vld [vmem:[%s1086_s4 + $0x10] sm:$0xff]  }
   0x3   :  { %771 = vmatprep.subr.bf16.mxu1 %v804_v1  ;;  %740 = vmatpush3.bf16.msra.mxu0 %v803_v0  ;;  %v809_v6 = vld [vmem:[%s1085_s2 + $0x18] sm:$0xff]   ;;  %v811_v8 = vld [vmem:[%s1085_s2 + $0x20] sm:$0xff]   ;;  %v813_v10 = vld [vmem:[%s1085_s2 + $0x28] sm:$0xff]  }
   0x4   :  { %772 = vmatpush3.bf16.msra.mxu1 %v804_v1  ;;  %741 = vmatprep.subr.bf16.mxu0 %v805_v2  ;;  %v810_v7 = vld [vmem:[%s1086_s4 + $0x18] sm:$0xff]   ;;  %v812_v9 = vld [vmem:[%s1086_s4 + $0x20] sm:$0xff]   ;;  %v814_v11 = vld [vmem:[%s1086_s4 + $0x28] sm:$0xff]  }
   0x5   :  { %773 = vmatprep.subr.bf16.mxu1 %v806_v3  ;;  %v819_v12 = vld [vmem:[%s1087_s0] sm:$0xff]   ;;  %v815_v14 = vld [vmem:[%s1085_s2 + $0x30] sm:$0xff]   ;;  %v817_v16 = vld [vmem:[%s1085_s2 + $0x38] sm:$0xff]  }
   0x6   :  { %v820_v13 = vld [vmem:[%s1088_s1] sm:$0xff]   ;;  %755 = vmatprep.mubr.bf16.mxu0 %v819_v12  ;;  %v816_v15 = vld [vmem:[%s1086_s4 + $0x30] sm:$0xff]   ;;  %v818_v17 = vld [vmem:[%s1086_s4 + $0x38] sm:$0xff]  }
   0x7   :  { %742 = vmatpush3.bf16.msra.mxu0 %v805_v2  ;;  %787 = vmatprep.mubr.bf16.mxu1 %v820_v13  ;;  %v821_v18 = vld [vmem:[%s1087_s0 + $0x8] sm:$0xff]   ;;  %v823_v20 = vld [vmem:[%s1087_s0 + $0x10] sm:$0xff]   ;;  %v825_v22 = vld [vmem:[%s1087_s0 + $0x18] sm:$0xff]  }
   0x8   :  { %774 = vmatpush3.bf16.msra.mxu1 %v806_v3  ;;  %743 = vmatprep.subr.bf16.mxu0 %v807_v4  ;;  %v822_v19 = vld [vmem:[%s1088_s1 + $0x8] sm:$0xff]   ;;  %v824_v21 = vld [vmem:[%s1088_s1 + $0x10] sm:$0xff]   ;;  %v826_v23 = vld [vmem:[%s1088_s1 + $0x18] sm:$0xff]  }
   0x9   :  { %775 = vmatprep.subr.bf16.mxu1 %v808_v5  ;;  %v827_v24 = vld [vmem:[%s1087_s0 + $0x20] sm:$0xff]   ;;  %v829_v26 = vld [vmem:[%s1087_s0 + $0x28] sm:$0xff]   ;;  %v831_v28 = vld [vmem:[%s1087_s0 + $0x30] sm:$0xff]  }
   0xa   :  { %v828_v25 = vld [vmem:[%s1088_s1 + $0x20] sm:$0xff]   ;;  %v830_v27 = vld [vmem:[%s1088_s1 + $0x28] sm:$0xff]   ;;  %v832_v29 = vld [vmem:[%s1088_s1 + $0x30] sm:$0xff]  }
   0xb   :  { %744 = vmatpush3.bf16.msra.mxu0 %v807_v4  ;;  %v833_v30 = vld [vmem:[%s1087_s0 + $0x38] sm:$0xff]   ;;  %v974_v32 = vld [vmem:[%s1089_s5] ss:$0 sm:$0xff] }
   0xc   :  { %776 = vmatpush3.bf16.msra.mxu1 %v808_v5  ;;  %745 = vmatprep.subr.bf16.mxu0 %v809_v6  ;;  %v834_v31 = vld [vmem:[%s1088_s1 + $0x38] sm:$0xff]   ;;  %v979_v34 = vld [vmem:[%s1090_s3] ss:$0 sm:$0xff] }
   0xd   :  { %777 = vmatprep.subr.bf16.mxu1 %v810_v7 }
   0xf   :  { %746 = vmatpush3.bf16.msra.mxu0 %v809_v6 }
  0x10   :  { %778 = vmatpush3.bf16.msra.mxu1 %v810_v7  ;;  %747 = vmatprep.subr.bf16.mxu0 %v811_v8 }
  0x11   :  { %779 = vmatprep.subr.bf16.mxu1 %v812_v9 }
  0x13   :  { %748 = vmatpush3.bf16.msra.mxu0 %v811_v8 }
  0x14   :  { %780 = vmatpush3.bf16.msra.mxu1 %v812_v9  ;;  %749 = vmatprep.subr.bf16.mxu0 %v813_v10 }
  0x15   :  { %781 = vmatprep.subr.bf16.mxu1 %v814_v11 }
  0x17   :  { %750 = vmatpush3.bf16.msra.mxu0 %v813_v10 }
  0x18   :  { %782 = vmatpush3.bf16.msra.mxu1 %v814_v11  ;;  %751 = vmatprep.subr.bf16.mxu0 %v815_v14 }
  0x19   :  { %783 = vmatprep.subr.bf16.mxu1 %v816_v15 }
  0x1b   :  { %752 = vmatpush3.bf16.msra.mxu0 %v815_v14 }
  0x1c   :  { %784 = vmatpush3.bf16.msra.mxu1 %v816_v15  ;;  %753 = vmatprep.subr.bf16.mxu0 %v817_v16 }
  0x1d   :  { %785 = vmatprep.subr.bf16.mxu1 %v818_v17 }
  0x1f   :  { %754 = vmatpush3.bf16.msra.mxu0 %v817_v16 }
  0x20   :  { %786 = vmatpush3.bf16.msra.mxu1 %v818_v17 }
  0x22   :  { %756 = vmatmul.mubr.bf16.vlgmr.msra.gmra.mrb[0].mxu0 %v821_v18 }
  0x23   :  { %788 = vmatmul.mubr.bf16.vlgmr.msra.gmra.mrb[0].mxu1 %v822_v19  ;;  %759 = vmatprep.mubr.bf16.mxu0 %v823_v20 }
  0x24   :  { %791 = vmatprep.mubr.bf16.mxu1 %v824_v21 }
  0x2a   :  { %760 = vmatmul.mubr.bf16.gmra.mrb[4].mxu0 %v825_v22 }
  0x2b   :  { %792 = vmatmul.mubr.bf16.gmra.mrb[4].mxu1 %v826_v23  ;;  %763 = vmatprep.mubr.bf16.mxu0 %v827_v24 }
  0x2c   :  { %795 = vmatprep.mubr.bf16.mxu1 %v828_v25 }
  0x32   :  { %764 = vmatmul.mubr.bf16.gmra.mrb[8].mxu0 %v829_v26 }
  0x33   :  { %796 = vmatmul.mubr.bf16.gmra.mrb[8].mxu1 %v830_v27  ;;  %767 = vmatprep.mubr.bf16.mxu0 %v831_v28 }
  0x34   :  { %799 = vmatprep.mubr.bf16.mxu1 %v832_v29 }
  0x3a   :  { %768 = vmatmul.mubr.bf16.gmra.mrb[12].mxu0 %v833_v30 }
  0x3b   :  { %800 = vmatmul.mubr.bf16.gmra.mrb[12].mxu1 %v834_v31 }
  0xf5   :  { %v757_v33 = vpop.f32.mrb[0].mxu0 }
  0xf6   :  { %v789_v35 = vpop.f32.mrb[0].mxu1  ;;  %v195_v36 = vpop.f32.mrb[1].mxu0  ;;  %v204_v40 = vadd.f32 %v757_v33, %v979_v34 }
  0xf7   :  { %v516_v37 = vadd.f32 %v789_v35, %v974_v32  ;;  %v507_v38 = vpop.f32.mrb[1].mxu1  ;;  %v758_v39 = vpop.f32.mrb[2].mxu0  ;;  %v196_v45 = vadd.f32 %v979_v34, %v195_v36 }
  0xf8   :  { %v508_v41 = vadd.f32 %v974_v32, %v507_v38  ;;  %v207_v42 = vadd.f32 %v758_v39, %v979_v34  ;;  %v790_v43 = vpop.f32.mrb[2].mxu1  ;;  %v198_v44 = vpop.f32.mrb[3].mxu0 }
  0xf9   :  { %572 = vst [vmem:[%s1091_s7 + $0x10] sm:$0xff] %v516_v37  ;;  %v519_v46 = vadd.f32 %v790_v43, %v974_v32  ;;  %v199_v47 = vadd.f32 %v979_v34, %v198_v44  ;;  %v510_v48 = vpop.f32.mrb[3].mxu1 }
  0xfa   :  { %570 = vst [vmem:[%s1091_s7] sm:$0xff] %v508_v41  ;;  %v668_v49 = vpack.c.bf16 %v207_v42, %v204_v40  ;;  %v511_v50 = vadd.f32 %v974_v32, %v510_v48 }
  0xfb   :  { %573 = vst [vmem:[%s1091_s7 + $0x18] sm:$0xff] %v519_v46  ;;  %v663_v51 = vpack.c.bf16 %v199_v47, %v196_v45 }
  0xfc   :  { %700 = vst [vmem:[%s1092_s6 + $0x8] sm:$0xff] %v668_v49   ;;  %571 = vst [vmem:[%s1091_s7 + $0x8] sm:$0xff] %v511_v50 }
  0xfd   :  { %664 = vst [vmem:[%s1092_s6] sm:$0xff] %v663_v51   ;;  %v761_v52 = vpop.f32.mrb[4].mxu0 }
  0xfe   :  { %v793_v53 = vpop.f32.mrb[4].mxu1  ;;  %v211_v54 = vpop.f32.mrb[5].mxu0  ;;  %v220_v58 = vadd.f32 %v761_v52, %v979_v34 }
  0xff   :  { %v532_v55 = vadd.f32 %v793_v53, %v974_v32  ;;  %v523_v56 = vpop.f32.mrb[5].mxu1  ;;  %v762_v57 = vpop.f32.mrb[6].mxu0  ;;  %v212_v63 = vadd.f32 %v979_v34, %v211_v54 }
 0x100   :  { %v524_v59 = vadd.f32 %v974_v32, %v523_v56  ;;  %v223_v60 = vadd.f32 %v762_v57, %v979_v34  ;;  %v794_v61 = vpop.f32.mrb[6].mxu1  ;;  %v214_v62 = vpop.f32.mrb[7].mxu0 }
 0x101   :  { %576 = vst [vmem:[%s1091_s7 + $0x30] sm:$0xff] %v532_v55  ;;  %v535_v0 = vadd.f32 %v794_v61, %v974_v32  ;;  %v215_v1 = vadd.f32 %v979_v34, %v214_v62  ;;  %v526_v2 = vpop.f32.mrb[7].mxu1 }
 0x102   :  { %574 = vst [vmem:[%s1091_s7 + $0x20] sm:$0xff] %v524_v59  ;;  %v678_v3 = vpack.c.bf16 %v223_v60, %v220_v58  ;;  %v527_v4 = vadd.f32 %v974_v32, %v526_v2 }
 0x103   :  { %577 = vst [vmem:[%s1091_s7 + $0x38] sm:$0xff] %v535_v0  ;;  %v673_v5 = vpack.c.bf16 %v215_v1, %v212_v63 }
 0x104   :  { %702 = vst [vmem:[%s1092_s6 + $0x18] sm:$0xff] %v678_v3   ;;  %575 = vst [vmem:[%s1091_s7 + $0x28] sm:$0xff] %v527_v4 }
 0x105   :  { %701 = vst [vmem:[%s1092_s6 + $0x10] sm:$0xff] %v673_v5   ;;  %v765_v6 = vpop.f32.mrb[8].mxu0 }
 0x106   :  { %v797_v7 = vpop.f32.mrb[8].mxu1  ;;  %v227_v8 = vpop.f32.mrb[9].mxu0  ;;  %v236_v12 = vadd.f32 %v765_v6, %v979_v34 }
 0x107   :  { %v548_v9 = vadd.f32 %v797_v7, %v974_v32  ;;  %v539_v10 = vpop.f32.mrb[9].mxu1  ;;  %v766_v11 = vpop.f32.mrb[10].mxu0  ;;  %v228_v17 = vadd.f32 %v979_v34, %v227_v8 }
 0x108   :  { %v540_v13 = vadd.f32 %v974_v32, %v539_v10  ;;  %v239_v14 = vadd.f32 %v766_v11, %v979_v34  ;;  %v798_v15 = vpop.f32.mrb[10].mxu1  ;;  %v230_v16 = vpop.f32.mrb[11].mxu0 }
 0x109   :  { %580 = vst [vmem:[%s1091_s7 + $0x50] sm:$0xff] %v548_v9  ;;  %v551_v18 = vadd.f32 %v798_v15, %v974_v32  ;;  %v231_v19 = vadd.f32 %v979_v34, %v230_v16  ;;  %v542_v20 = vpop.f32.mrb[11].mxu1 }
 0x10a   :  { %578 = vst [vmem:[%s1091_s7 + $0x40] sm:$0xff] %v540_v13  ;;  %v688_v21 = vpack.c.bf16 %v239_v14, %v236_v12  ;;  %v543_v22 = vadd.f32 %v974_v32, %v542_v20 }
 0x10b   :  { %581 = vst [vmem:[%s1091_s7 + $0x58] sm:$0xff] %v551_v18  ;;  %v683_v23 = vpack.c.bf16 %v231_v19, %v228_v17 }
 0x10c   :  { %704 = vst [vmem:[%s1092_s6 + $0x28] sm:$0xff] %v688_v21   ;;  %579 = vst [vmem:[%s1091_s7 + $0x48] sm:$0xff] %v543_v22 }
 0x10d   :  { %703 = vst [vmem:[%s1092_s6 + $0x20] sm:$0xff] %v683_v23   ;;  %v769_v24 = vpop.f32.mrb[12].mxu0 }
 0x10e   :  { %v801_v25 = vpop.f32.mrb[12].mxu1  ;;  %v243_v26 = vpop.f32.mrb[13].mxu0  ;;  %v252_v30 = vadd.f32 %v769_v24, %v979_v34 }
 0x10f   :  { %v564_v27 = vadd.f32 %v801_v25, %v974_v32  ;;  %v555_v28 = vpop.f32.mrb[13].mxu1  ;;  %v770_v29 = vpop.f32.mrb[14].mxu0  ;;  %v244_v37 = vadd.f32 %v979_v34, %v243_v26 }
 0x110   :  { %v556_v31 = vadd.f32 %v974_v32, %v555_v28  ;;  %v255_v33 = vadd.f32 %v770_v29, %v979_v34  ;;  %v802_v35 = vpop.f32.mrb[14].mxu1  ;;  %v246_v36 = vpop.f32.mrb[15].mxu0 }
 0x111   :  { %584 = vst [vmem:[%s1091_s7 + $0x70] sm:$0xff] %v564_v27  ;;  %v567_v38 = vadd.f32 %v802_v35, %v974_v32  ;;  %v247_v39 = vadd.f32 %v979_v34, %v246_v36  ;;  %v558_v40 = vpop.f32.mrb[15].mxu1 }
 0x112   :  { %582 = vst [vmem:[%s1091_s7 + $0x60] sm:$0xff] %v556_v31  ;;  %v698_v41 = vpack.c.bf16 %v255_v33, %v252_v30  ;;  %v559_v42 = vadd.f32 %v974_v32, %v558_v40 }
 0x113   :  { %585 = vst [vmem:[%s1091_s7 + $0x78] sm:$0xff] %v567_v38  ;;  %v693_v43 = vpack.c.bf16 %v247_v39, %v244_v37 }
 0x114   :  { %706 = vst [vmem:[%s1092_s6 + $0x38] sm:$0xff] %v698_v41   ;;  %583 = vst [vmem:[%s1091_s7 + $0x68] sm:$0xff] %v559_v42 }
 0x115   :  { %705 = vst [vmem:[%s1092_s6 + $0x30] sm:$0xff] %v693_v43  }

// kernel: bottleneck_forward.3
= control target key start
LH: loop header
LB: loop body
LE: loop exit
PB: predicated region body
PF: predicated region fallthrough
CT: control target
= control target key end

     0   :  { %s3876_s17 = smov 0   ;;  %s4787_s0 = inlined_call_operand.vmem [shape: bf16[2,112,128], index: 0, kind: input, shape index: {}]   ;;  %s4788_s1 = inlined_call_operand.vmem [shape: f32[2,80,128], index: 1, kind: input, shape index: {}, may-alias: {1,11}]   ;;  %s4789_s2 = inlined_call_operand.vmem [shape: f32[80,1], index: 2, kind: input, shape index: {}]   ;;  %s4790_s3 = inlined_call_operand.vmem [shape: bf16[9,128,128], index: 3, kind: input, shape index: {}]   ;;  %s4791_s4 = inlined_call_operand.vmem [shape: f32[1,128], index: 4, kind: input, shape index: {}]   ;;  %s4792_s5 = inlined_call_operand.vmem [shape: bf16[128,128], index: 5, kind: input, shape index: {}]   ;;  %s4793_s6 = inlined_call_operand.vmem [shape: f32[1,128], index: 6, kind: input, shape index: {}]   ;;  %s4794_s7 = inlined_call_operand.vmem [shape: bf16[128,128], index: 7, kind: input, shape index: {}]   ;;  %s4795_s8 = inlined_call_operand.vmem [shape: f32[1,128], index: 8, kind: input, shape index: {}]   ;;  %s4796_s9 = inlined_call_operand.vmem [shape: bf16[128,128], index: 9, kind: input, shape index: {}]   ;;  %s4797_s10 = inlined_call_operand.vmem [shape: f32[1,128], index: 10, kind: input, shape index: {}]   ;;  %s4798_s11 = inlined_call_operand.vmem [shape: f32[2,80,128], index: 11, kind: output, shape index: {}, may-alias: {1,11}]  }
   0x1 LB: > { %s2840_s18 = sadd.s32 4294967295, %s3811_s17   ;;  %p2844_p0 = scmp.ge.s32.totalorder %s3811_s17, 1  ;;  %s3811_s17 = sphi %s3876_s17, %s21_s17  }
   0x2   : > { %p347_p1 = scmp.lt.s32.totalorder %s3811_s17, 3 }
   0x4   : > { %p348_p2 = pnand %p2844_p0, %p347_p1 }
   0x5   : > { %v3672_v0 = vld [vmem:[%s4790_s3 + $0x40] sm:$0xff] (!%p348_p2)   ;;  %v3813_v1 = vmov (!%p348_p2), 0.0   ;;  %v3674_v3 = vld [vmem:[%s4790_s3 + $0x48] sm:$0xff] (!%p348_p2)   ;;  %vm3814_vm0 = vmmov (!%p348_p2), 0   ;;  %p392_p3 = scmp.lt.s32.totalorder (!%p348_p2), %s2840_s18, 1  ;;  %v3676_v5 = vld [vmem:[%s4790_s3 + $0x50] sm:$0xff] (!%p348_p2)  }
   0x6   : > { %351 = sbr.rel (%p348_p2) target bundleno = 1164 (0x48c), region = 64  ;;  %3257 = vmatprep.subr.bf16.mxu0 (!%p348_p2), %v3813_v1  ;;  %3293 = vmatprep.subr.bf16.mxu1 (!%p348_p2), %v3813_v1  ;;  %v3673_v2 = vld [vmem:[%s4790_s3] sm:$0xff] (!%p348_p2)   ;;  %v3675_v4 = vld [vmem:[%s4790_s3 + $0x8] sm:$0xff] (!%p348_p2)   ;;  %v3677_v6 = vld [vmem:[%s4790_s3 + $0x10] sm:$0xff] (!%p348_p2)   ;;  %vm611_vm1 = vsmask.f32 (!%p348_p2), 4352 }
   0x7   : > { %3258 = vmatpush3.bf16.msra.mxu0 (!%p348_p2), %v3672_v0  ;;  %3273 = vmatprep.mubr.msk.bf16.mxu0 (!%p348_p2), %vm3814_vm0, %v3813_v1  ;;  %v3678_v7 = vld [vmem:[%s4790_s3 + $0x58] sm:$0xff] (!%p348_p2)   ;;  %v3680_v9 = vld [vmem:[%s4790_s3 + $0x60] sm:$0xff] (!%p348_p2)   ;;  %v3682_v16 = vld [vmem:[%s4790_s3 + $0x68] sm:$0xff] (!%p348_p2)   ;;  %vm847_vm2 = vsmask.f32 (!%p348_p2), 7424  ;;  %vm1285_vm3 = vcmask (!%p348_p2), 1046528  }
   0x8   : > { %3294 = vmatpush3.bf16.msra.mxu1 (!%p348_p2), %v3673_v2  ;;  %3259 = vmatprep.subr.bf16.mxu0 (!%p348_p2), %v3813_v1  ;;  %v3679_v8 = vld [vmem:[%s4790_s3 + $0x18] sm:$0xff] (!%p348_p2)   ;;  %v3681_v10 = vld [vmem:[%s4790_s3 + $0x20] sm:$0xff] (!%p348_p2)   ;;  %v3683_v18 = vld [vmem:[%s4790_s3 + $0x28] sm:$0xff] (!%p348_p2)   ;;  %vm1454_vm4 = vsmask.f32 (!%p348_p2), 6400  ;;  %vm1890_vm5 = vcmask (!%p348_p2), 1045504  }
   0x9   : > { %3295 = vmatprep.subr.bf16.mxu1 (!%p348_p2), %v3813_v1  ;;  %3309 = vmatprep.mubr.msk.bf16.mxu1 (!%p348_p2), %vm3814_vm0, %v3813_v1  ;;  %v3684_v25 = vld [vmem:[%s4790_s3 + $0x70] sm:$0xff] (!%p348_p2)   ;;  %v3686_v32 = vld [vmem:[%s4790_s3 + $0x78] sm:$0xff] (!%p348_p2)   ;;  %v3691_v41 = vld [vmem:[%s4790_s3 + $0x80] sm:$0xff] (!%p348_p2)   ;;  %vm2059_vm6 = vsmask.f32 (!%p348_p2), 5376 }
   0xa   : > { %v3685_v26 = vld [vmem:[%s4790_s3 + $0x30] sm:$0xff] (!%p348_p2)   ;;  %v3687_v33 = vld [vmem:[%s4790_s3 + $0x38] sm:$0xff] (!%p348_p2)   ;;  %v3696_v46 = vld [vmem:[%s4790_s3 + $0xc0] sm:$0xff] (!%p348_p2)  }
   0xb   : > { %3260 = vmatpush3.bf16.msra.mxu0 (!%p348_p2), %v3674_v3  ;;  %v3692_v47 = vld [vmem:[%s4790_s3 + $0x88] sm:$0xff] (!%p348_p2)   ;;  %v3695_v55 = vld [vmem:[%s4790_s3 + $0x90] sm:$0xff] (!%p348_p2)   ;;  %v3700_v61 = vld [vmem:[%s4790_s3 + $0x98] sm:$0xff] (!%p348_p2)  }
   0xc   : > { %3296 = vmatpush3.bf16.msra.mxu1 (!%p348_p2), %v3675_v4  ;;  %3261 = vmatprep.subr.bf16.mxu0 (!%p348_p2), %v3813_v1  ;;  %v3697_v48 = vld [vmem:[%s4790_s3 + $0xc8] sm:$0xff] (!%p348_p2)   ;;  %v3701_v60 = vld [vmem:[%s4790_s3 + $0xd0] sm:$0xff] (!%p348_p2)   ;;  %v3703_v62 = vld [vmem:[%s4790_s3 + $0xd8] sm:$0xff] (!%p348_p2)  }
   0xd   : > { %s4800_s18 = smov (!%p392_p3, %s2840_s18), 1  ;;  %3297 = vmatprep.subr.bf16.mxu1 %v3813_v1 }
   0xe   : > { %s3657_s12 = smul.u32 56, %s4800_s18 }
   0xf   : > { %3262 = vmatpush3.bf16.msra.mxu0 %v3676_v5  ;;  %s3658_s29 = smul.u32 80, %s4800_s18 }
  0x10   : > { %3298 = vmatpush3.bf16.msra.mxu1 %v3677_v6  ;;  %3263 = vmatprep.subr.bf16.mxu0 %v3813_v1  ;;  %s3926_s21 = scalar_lea.vmem %s4787_s0, %s3657_s12  ;;  %v3702_v6 = vld [vmem:[%s4790_s3 + $0xa0] sm:$0xff]  }
  0x11   : > { %3299 = vmatprep.subr.bf16.mxu1 %v3813_v1  ;;  %v408_v11 = vld [vmem:[%s3926_s21] sm:$0x8]  ;;  %v409_v12 = vld [vmem:[%s3926_s21 + $0x4] sm:$0xf]  ;;  %v410_v13 = vld [vmem:[%s3926_s21 + $0x8] sm:$0xf]  ;;  %s401_s13 = scalar_lea.vmem %s4788_s1, %s3658_s29  ;;  %s406_s16 = scalar_lea.vmem %s4798_s11, %s3658_s29 }
  0x12   : > { %v3940_v14 = vld [vmem:[%s3926_s21 + $0xc] sm:$0xf]  ;;  %v2877_v15 = vcombine.low %v408_v11, %v409_v12  ;;  %v412_v23 = vld [vmem:[%s3926_s21 + $0x10] sm:$0xf]  ;;  %v3953_v24 = vld [vmem:[%s3926_s21 + $0x14] sm:$0xf]  ;;  %v2864_v40 = vcombine.low %v409_v12, %v410_v13 }
  0x13   : > { %3264 = vmatpush3.bf16.msra.mxu0 %v3678_v7  ;;  %v2878_v17 = vcombine.low %v410_v13, %v3940_v14  ;;  %v2879_v27 = vcombine.low %v412_v23, %v3953_v24  ;;  %v3972_v38 = vld [vmem:[%s3926_s21 + $0x18] sm:$0xf]  ;;  %v3975_v39 = vld [vmem:[%s3926_s21 + $0x1c] sm:$0xf]  ;;  %v3999_v52 = vld [vmem:[%s3926_s21 + $0x20] sm:$0xf]  ;;  %v2865_v54 = vcombine.low %v3940_v14, %v412_v23 }
  0x14   : > { %3300 = vmatpush3.bf16.msra.mxu1 %v3679_v8  ;;  %3265 = vmatprep.subr.bf16.mxu0 %v3813_v1  ;;  %v613_v19 = vshrl.u32 %v2877_v15, 16  ;;  %v616_v20 = vshll.u32 %v2877_v15, 16  ;;  %v2880_v42 = vcombine.low %v3972_v38, %v3975_v39  ;;  %v4002_v53 = vld [vmem:[%s3926_s21 + $0x24] sm:$0xf]  ;;  %v4026_v63 = vld [vmem:[%s3926_s21 + $0x28] sm:$0xf]  ;;  %v2866_v4 = vcombine.low %v3953_v24, %v3972_v38 }
  0x15   : > { %3301 = vmatprep.subr.bf16.mxu1 %v3813_v1  ;;  %v621_v21 = vshrl.u32 %v2878_v17, 16  ;;  %v624_v22 = vshll.u32 %v2878_v17, 16  ;;  %v630_v34 = vshrl.u32 %v2879_v27, 16  ;;  %v633_v35 = vshll.u32 %v2879_v27, 16  ;;  %v3707_v11 = vld [vmem:[%s4790_s3 + $0xe0] sm:$0xff]   ;;  %v3709_v14 = vld [vmem:[%s4790_s3 + $0xe8] sm:$0xff]  }
  0x16   : > { %v615_v28 = vrot.slane %v613_v19, 3  ;;  %v618_v29 = vrot.slane %v616_v20, 4  ;;  %v639_v49 = vshrl.u32 %v2880_v42, 16  ;;  %v642_v50 = vshll.u32 %v2880_v42, 16  ;;  %v4060_v17 = vld [vmem:[%s3926_s21 + $0xc] sm:$0xf] }
  0x17   : > { %3266 = vmatpush3.bf16.msra.mxu0 %v3680_v9  ;;  %v623_v30 = vrot.slane %v621_v21, 3  ;;  %v626_v31 = vrot.slane %v624_v22, 4  ;;  %v632_v44 = vrot.slane %v630_v34, 3  ;;  %v635_v45 = vrot.slane %v633_v35, 4  ;;  %v3715_v19 = vld [vmem:[%s3926_s21 + $0x4] sm:$0xff]   ;;  %v3708_v21 = vld [vmem:[%s4790_s3 + $0xb0] sm:$0xff]  }
  0x18   : > { %3302 = vmatpush3.bf16.msra.mxu1 %v3681_v10  ;;  %3267 = vmatprep.subr.bf16.mxu0 %v3813_v1  ;;  %v619_v36 = vor.u32 %v618_v29, %v615_v28  ;;  %v641_v57 = vrot.slane %v639_v49, 3  ;;  %v644_v58 = vrot.slane %v642_v50, 4  ;;  %v2881_v59 = vcombine.low %v3999_v52, %v4002_v53  ;;  %v3706_v10 = vld [vmem:[%s4790_s3 + $0xa8] sm:$0xff]   ;;  %v3712_v24 = vld [vmem:[%s4790_s3 + $0xf0] sm:$0xff]  }
  0x19   : > { %3303 = vmatprep.subr.bf16.mxu1 %v3813_v1  ;;  %v627_v37 = vor.u32 %v626_v31, %v623_v30  ;;  %v636_v51 = vor.u32 %v635_v45, %v632_v44  ;;  %v2882_v5 = vcombine.low %v4026_v63, %v4026_v63  ;;  %v3716_v27 = vld [vmem:[%s3926_s21 + $0xc] sm:$0xff]   ;;  %v851_v28 = vshll.u32 %v3715_v19, 16 }
  0x1a   : > { %v645_v0 = vor.u32 %v644_v58, %v641_v57  ;;  %v648_v2 = vshrl.u32 %v2881_v59, 16  ;;  %v651_v3 = vshll.u32 %v2881_v59, 16  ;;  %v4085_v30 = vld [vmem:[%s3926_s21 + $0x10] sm:$0xff]   ;;  %v849_v34 = vshrl.u32 %v3715_v19, 16  ;;  %v3726_v58 = vld [vmem:[%s3926_s21 + $0x1c] sm:$0xff]  }
  0x1b   : > { %3268 = vmatpush3.bf16.msra.mxu0 %v3682_v16  ;;  %v628_v43 = vsel %vm611_vm1, %v619_v36, %v627_v37  ;;  %v637_v56 = vsel %vm611_vm1, %v627_v37, %v636_v51  ;;  %v657_v12 = vshrl.u32 %v2882_v5, 16  ;;  %v660_v13 = vshll.u32 %v2882_v5, 16  ;;  %v1028_v16 = vld [vmem:[%s3926_s21 + $0x8] sm:$0xf] }
  0x1c   : > { %3304 = vmatpush3.bf16.msra.mxu1 %v3683_v18  ;;  %3269 = vmatprep.subr.bf16.mxu0 %v3813_v1  ;;  %v646_v7 = vsel %vm611_vm1, %v636_v51, %v645_v0  ;;  %v650_v8 = vrot.slane %v648_v2, 3  ;;  %v653_v9 = vrot.slane %v651_v3, 4  ;;  %v2867_v18 = vcombine.low %v3975_v39, %v3999_v52 }
  0x1d   : > { %3305 = vmatprep.subr.bf16.mxu1 %v3813_v1  ;;  %v659_v22 = vrot.slane %v657_v12, 3  ;;  %v662_v23 = vrot.slane %v660_v13, 4  ;;  %v853_v35 = vrot.slane %v851_v28, 1  ;;  %v856_v36 = vshll.u32 %v3716_v27, 16 }
  0x1e   : > { %v654_v15 = vor.u32 %v653_v9, %v650_v8  ;;  %v860_v49 = vshrl.u32 %v3716_v27, 16  ;;  %v1096_v52 = vshrl.u32 %v4085_v30, 16  ;;  %v872_v3 = vshll.u32 %v3726_v58, 16 }
  0x1f   : > { %3270 = vmatpush3.bf16.msra.mxu0 %v3684_v25  ;;  %v2937_v25 = vcombine.low %v1028_v16, %v4060_v17  ;;  %v663_v29 = vor.u32 %v662_v23, %v659_v22  ;;  %v858_v42 = vrot.slane %v856_v36, 1  ;;  %v876_v19 = vshrl.u32 %v3726_v58, 16 }
  0x20   : > { %3306 = vmatpush3.bf16.msra.mxu1 %v3685_v26  ;;  %3271 = vmatprep.subr.bf16.mxu0 %v3813_v1  ;;  %v655_v20 = vsel %vm611_vm1, %v645_v0, %v654_v15  ;;  %v3713_v26 = vld [vmem:[%s4790_s3 + $0xb8] sm:$0xff]   ;;  %v874_v9 = vrot.slane %v872_v3, 1 }
  0x21   : > { %3307 = vmatprep.subr.bf16.mxu1 %v3813_v1  ;;  %v1087_v31 = vshll.u32 %v2937_v25, 16  ;;  %v664_v37 = vsel %vm611_vm1, %v654_v15, %v663_v29  ;;  %v1085_v38 = vshrl.u32 %v2937_v25, 16  ;;  %v3731_v15 = vld [vmem:[%s4790_s3 + $0x158] sm:$0xff]   ;;  %v3734_v25 = vld [vmem:[%s4790_s3 + $0x128] sm:$0xff]  }
  0x22   : > { %v878_v27 = vor.u32 %v876_v19, %v874_v9  ;;  %v4187_v29 = vld [vmem:[%s3926_s21 + $0x30] ss:$0 sps:$4 sm:$0x11]  }
  0x23   : > { %3272 = vmatpush3.bf16.msra.mxu0 %v3686_v32  ;;  %v3714_v32 = vld [vmem:[%s4790_s3 + $0xf8] sm:$0xff]   ;;  %v1089_v39 = vrot.slane %v1087_v31, 1 }
  0x24   : > { %3308 = vmatpush3.bf16.msra.mxu1 %v3687_v33  ;;  %3329 = vmatprep.subr.bf16.mxu0 %v3813_v1  ;;  %v2868_v33 = vcombine.low %v4002_v53, %v4026_v63  ;;  %v3723_v63 = vld [vmem:[%s4790_s3 + $0x110] sm:$0xff]  }
  0x25   : > { %3365 = vmatprep.subr.bf16.mxu1 %v3813_v1  ;;  %v1090_v44 = vor.u32 %v1089_v39, %v1085_v38  ;;  %v3736_v39 = vld [vmem:[%s4790_s3 + $0x130] sm:$0xff]  }
  0x26   : > { %3274 = vmatmul.mubr.bf16.vlgmr.msra.gmra.mrb[0].mxu0 %v2864_v40  ;;  %v1092_v40 = vshll.u32 %v4085_v30, 16 }
  0x27   : > { %3310 = vmatmul.mubr.bf16.vlgmr.msra.gmra.mrb[0].mxu1 %v628_v43  ;;  %3330 = vmatpush3.bf16.msra.mxu0 %v3691_v41  ;;  %v854_v41 = vor.u32 %v853_v35, %v849_v34  ;;  %v3721_v43 = vld [vmem:[%s3926_s21 + $0x14] sm:$0xff]   ;;  %v1264_v34 = vld [vmem:[%s3926_s21 + $0x8] sm:$0xe] }
  0x28   : > { %3331 = vmatprep.subr.bf16.mxu0 %v3813_v1  ;;  %3277 = vmatprep.mubr.msk.bf16.mxu0 %vm3814_vm0, %v3813_v1  ;;  %v1094_v45 = vrot.slane %v1092_v40, 1  ;;  %v864_v50 = vshll.u32 %v3721_v43, 16  ;;  %v868_v2 = vshrl.u32 %v3721_v43, 16  ;;  %v2967_v43 = vcombine.low %v1264_v34, %v4060_v17  ;;  %v1625_v34 = vld [vmem:[%s3926_s21 + $0x10] sm:$0xf] }
  0x29   : > { %3313 = vmatprep.mubr.msk.bf16.mxu1 %vm3814_vm0, %v3813_v1  ;;  %3366 = vmatpush3.bf16.msra.mxu1 %v3696_v46  ;;  %v4106_v46 = vld [vmem:[%s3926_s21 + $0x18] sm:$0xff]  }
  0x2a   : > { %3367 = vmatprep.subr.bf16.mxu1 %v3813_v1  ;;  %v1095_v51 = vsel %vm847_vm2, %v1090_v44, %v1094_v45  ;;  %v1100_v53 = vshll.u32 %v4106_v46, 16  ;;  %v866_v57 = vrot.slane %v864_v50, 1  ;;  %v1098_v59 = vor.u32 %v1096_v52, %v1094_v45  ;;  %v3740_v44 = vld [vmem:[%s4790_s3 + $0x170] sm:$0xff]  }
  0x2b   : > { %3332 = vmatpush3.bf16.msra.mxu0 %v3692_v47  ;;  %v859_v47 = vsel %vm847_vm2, %v854_v41, %v858_v42  ;;  %v1104_v5 = vshrl.u32 %v4106_v46, 16  ;;  %v1456_v50 = vshrl.u32 %v2967_v43, 16 }
  0x2c   : > { %3333 = vmatprep.subr.bf16.mxu0 %v3813_v1  ;;  %v870_v8 = vor.u32 %v868_v2, %v866_v57  ;;  %v1289_v2 = vrot.slane %v4106_v46, 1  ;;  %v3745_v46 = vld [vmem:[%s4790_s3 + $0x188] sm:$0xff]  }
  0x2d   : > { %3368 = vmatpush3.bf16.msra.mxu1 %v3697_v48  ;;  %v3717_v48 = vld [vmem:[%s4790_s3 + $0x100] sm:$0xff]   ;;  %v1458_v58 = vrot.slane %v1456_v50, 1  ;;  %v1467_v3 = vrot.slane %v1104_v5, 1  ;;  %v3760_v50 = vld [vmem:[%s4790_s3 + $0x1f8] sm:$0xff]  }
  0x2e   : > { %3278 = vmatmul.mubr.bf16.gmra.mrb[4].mxu0 %v2865_v54  ;;  %3369 = vmatprep.subr.bf16.mxu1 %v3813_v1  ;;  %v3724_v54 = vld [vmem:[%s4790_s3 + $0x140] sm:$0xff]   ;;  %v875_v16 = vsel %vm847_vm2, %v870_v8, %v874_v9 }
  0x2f   : > { %3314 = vmatmul.mubr.bf16.gmra.mrb[4].mxu1 %v637_v56  ;;  %3334 = vmatpush3.bf16.msra.mxu0 %v3695_v55  ;;  %v3720_v55 = vld [vmem:[%s4790_s3 + $0x108] sm:$0xff]   ;;  %v862_v56 = vor.u32 %v860_v49, %v858_v42  ;;  %v1124_v42 = vshll.u32 %v4187_v29, 16  ;;  %v3741_v49 = vld [vmem:[%s4790_s3 + $0x138] sm:$0xff]  }
  0x30   : > { %3281 = vmatprep.mubr.msk.bf16.mxu0 %vm3814_vm0, %v3813_v1  ;;  %3317 = vmatprep.mubr.msk.bf16.mxu1 %vm3814_vm0, %v3813_v1 }
  0x31   : > { %3335 = vmatprep.subr.bf16.mxu0 %v3813_v1  ;;  %3370 = vmatpush3.bf16.msra.mxu1 %v3701_v60  ;;  %v1102_v60 = vrot.slane %v1100_v53, 1  ;;  %v867_v0 = vsel %vm847_vm2, %v862_v56, %v866_v57 }
  0x32   : > { %3371 = vmatprep.subr.bf16.mxu1 %v3813_v1 }
  0x33   : > { %3336 = vmatpush3.bf16.msra.mxu0 %v3700_v61  ;;  %v4130_v61 = vld [vmem:[%s3926_s21 + $0x20] sm:$0xff]   ;;  %v1106_v12 = vor.u32 %v1104_v5, %v1102_v60 }
  0x34   : > { %3337 = vmatprep.subr.bf16.mxu0 %v3813_v1  ;;  %v1112_v22 = vshrl.u32 %v4130_v61, 16  ;;  %v1291_v8 = vrot.slane %v4130_v61, 1 }
  0x35   : > { %3372 = vmatpush3.bf16.msra.mxu1 %v3703_v62  ;;  %v3725_v62 = vld [vmem:[%s4790_s3 + $0x148] sm:$0xff]  }
  0x36   : > { %3282 = vmatmul.mubr.bf16.gmra.mrb[8].mxu0 %v2866_v4  ;;  %3373 = vmatprep.subr.bf16.mxu1 %v3813_v1  ;;  %v1103_v4 = vsel %vm847_vm2, %v1098_v59, %v1102_v60  ;;  %v1464_v60 = vrot.slane %v1092_v40, 2  ;;  %v1292_v19 = vsel %vm1285_vm3, %v1289_v2, %v1291_v8 }
  0x37   : > { %3318 = vmatmul.mubr.bf16.gmra.mrb[8].mxu1 %v646_v7  ;;  %3338 = vmatpush3.bf16.msra.mxu0 %v3702_v6  ;;  %v1108_v6 = vshll.u32 %v4130_v61, 16  ;;  %v3729_v7 = vld [vmem:[%s4790_s3 + $0x150] sm:$0xff]  }
  0x38   : > { %3285 = vmatprep.mubr.msk.bf16.mxu0 %vm3814_vm0, %v3813_v1  ;;  %3321 = vmatprep.mubr.msk.bf16.mxu1 %vm3814_vm0, %v3813_v1  ;;  %v3746_v61 = vld [vmem:[%s4790_s3 + $0x190] sm:$0xff]  }
  0x39   : > { %3339 = vmatprep.subr.bf16.mxu0 %v3813_v1  ;;  %3374 = vmatpush3.bf16.msra.mxu1 %v3707_v11  ;;  %v3732_v11 = vld [vmem:[%s3926_s21 + $0x24] sm:$0xff]   ;;  %v1110_v13 = vrot.slane %v1108_v6, 1 }
  0x3a   : > { %3375 = vmatprep.subr.bf16.mxu1 %v3813_v1  ;;  %v884_v36 = vshrl.u32 %v3732_v11, 16 }
  0x3b   : > { %3340 = vmatpush3.bf16.msra.mxu0 %v3706_v10  ;;  %v3727_v10 = vld [vmem:[%s4790_s3 + $0x118] sm:$0xff]   ;;  %v1114_v31 = vor.u32 %v1112_v22, %v1110_v13 }
  0x3c   : > { %3341 = vmatprep.subr.bf16.mxu0 %v3813_v1 }
  0x3d   : > { %3376 = vmatpush3.bf16.msra.mxu1 %v3709_v14  ;;  %v4162_v14 = vld [vmem:[%s3926_s21 + $0x28] sm:$0xff]  }
  0x3e   : > { %3286 = vmatmul.mubr.bf16.gmra.mrb[12].mxu0 %v2867_v18  ;;  %3377 = vmatprep.subr.bf16.mxu1 %v3813_v1  ;;  %v3730_v18 = vld [vmem:[%s4790_s3 + $0x120] sm:$0xff]   ;;  %v1116_v23 = vshll.u32 %v4162_v14, 16  ;;  %v1120_v41 = vshrl.u32 %v4162_v14, 16 }
  0x3f   : > { %3322 = vmatmul.mubr.bf16.gmra.mrb[12].mxu1 %v655_v20  ;;  %3289 = vmatprep.mubr.msk.bf16.mxu0 %vm3814_vm0, %v3813_v1  ;;  %v880_v20 = vshll.u32 %v3732_v11, 16  ;;  %v1472_v11 = vrot.slane %v1108_v6, 2 }
  0x40   : > { %3325 = vmatprep.mubr.msk.bf16.mxu1 %vm3814_vm0, %v3813_v1  ;;  %3342 = vmatpush3.bf16.msra.mxu0 %v3708_v21  ;;  %v1111_v21 = vsel %vm847_vm2, %v1106_v12, %v1110_v13  ;;  %v3750_v12 = vld [vmem:[%s4790_s3 + $0x1d0] sm:$0xff]  }
  0x41   : > { %3343 = vmatprep.subr.bf16.mxu0 %v3813_v1  ;;  %3378 = vmatpush3.bf16.msra.mxu1 %v3712_v24  ;;  %v3735_v24 = vld [vmem:[%s4790_s3 + $0x160] sm:$0xff]   ;;  %v882_v28 = vrot.slane %v880_v20, 1 }
  0x42   : > { %3379 = vmatprep.subr.bf16.mxu1 %v3813_v1  ;;  %v3751_v20 = vld [vmem:[%s4790_s3 + $0x1a0] sm:$0xff]  }
  0x43   : > { %v883_v35 = vsel %vm847_vm2, %v878_v27, %v882_v28  ;;  %v886_v45 = vor.u32 %v884_v36, %v882_v28  ;;  %v1293_v27 = vrot.slane %v4162_v14, 1  ;;  %v3753_v28 = vld [vmem:[%s4790_s3 + $0x1a8] sm:$0xff]  }
  0x44   : > { %3344 = vmatpush3.bf16.msra.mxu0 %v3713_v26  ;;  %v3738_v26 = vld [vmem:[%s3926_s21 + $0x2c] ss:$0 sps:$4 sm:$0x11]  }
  0x45   : > { %3380 = vmatpush3.bf16.msra.mxu1 %v3714_v32  ;;  %3401 = vmatprep.subr.bf16.mxu0 %v3813_v1  ;;  %v1118_v32 = vrot.slane %v1116_v23, 1  ;;  %v3756_v14 = vld [vmem:[%s4790_s3 + $0x1e8] sm:$0xff]  }
  0x46   : > { %3290 = vmatmul.mubr.bf16.gmra.mrb[16].mxu0 %v2868_v33  ;;  %3437 = vmatprep.subr.bf16.mxu1 %v3813_v1  ;;  %v3737_v33 = vld [vmem:[%s4790_s3 + $0x168] sm:$0xff]  }
  0x47   : > { %3326 = vmatmul.mubr.bf16.gmra.mrb[16].mxu1 %v664_v37  ;;  %3345 = vmatprep.mubr.msk.bf16.mxu0 %vm3814_vm0, %v3813_v1  ;;  %v888_v37 = vshll.u32 %v3738_v26, 16  ;;  %v1119_v38 = vsel %vm847_vm2, %v1114_v31, %v1118_v32  ;;  %v1122_v17 = vor.u32 %v1120_v41, %v1118_v32  ;;  %v3754_v26 = vld [vmem:[%s4790_s3 + $0x1e0] sm:$0xff]  }
  0x48   : > { %3381 = vmatprep.mubr.msk.bf16.mxu1 %vm3814_vm0, %v3813_v1 }
  0x4e   : > { %3346 = vmatmul.mubr.bf16.vlgmr.msra.gmra.mrb[20].mxu0 %v859_v47  ;;  %v890_v47 = vrot.slane %v888_v37, 1  ;;  %v4327_v37 = vld [vmem:[%s3926_s21 + $0x14] sm:$0xff]  }
  0x4f   : > { %3402 = vmatpush3.bf16.msra.mxu0 %v3717_v48  ;;  %3382 = vmatmul.mubr.bf16.vlgmr.msra.gmra.mrb[20].mxu1 %v1095_v51  ;;  %v1126_v48 = vrot.slane %v1124_v42, 1  ;;  %v1459_v51 = vshll.u32 %v2967_v43, 16 }
  0x50   : > { %3403 = vmatprep.subr.bf16.mxu0 %v3813_v1  ;;  %3349 = vmatprep.mubr.msk.bf16.mxu0 %vm3814_vm0, %v3813_v1  ;;  %v891_v56 = vsel %vm847_vm2, %v886_v45, %v890_v47 }
  0x51   : > { %3385 = vmatprep.mubr.msk.bf16.mxu1 %vm3814_vm0, %v3813_v1  ;;  %3438 = vmatpush3.bf16.msra.mxu1 %v3724_v54  ;;  %v3742_v54 = vld [vmem:[%s4790_s3 + $0x178] sm:$0xff]   ;;  %v1127_v57 = vsel %vm847_vm2, %v1122_v17, %v1126_v48  ;;  %v1461_v59 = vrot.slane %v1459_v51, 2  ;;  %v1689_v17 = vshrl.u32 %v4327_v37, 16  ;;  %v1692_v48 = vshll.u32 %v4327_v37, 16  ;;  %v1869_v51 = vld [vmem:[%s3926_s21 + $0xc] sm:$0xc] }
  0x52   : > { %3439 = vmatprep.subr.bf16.mxu1 %v3813_v1 }
  0x53   : > { %3404 = vmatpush3.bf16.msra.mxu0 %v3720_v55  ;;  %v1463_v55 = vrot.slane %v1096_v52, 1  ;;  %v1286_v52 = vrot.slane %v2967_v43, 1  ;;  %v3758_v43 = vld [vmem:[%s4790_s3 + $0x1f0] sm:$0xff]  }
  0x54   : > { %3405 = vmatprep.subr.bf16.mxu0 %v3813_v1 }
  0x55   : > { %3440 = vmatpush3.bf16.msra.mxu1 %v3725_v62  ;;  %v1287_v62 = vrot.slane %v4085_v30, 1  ;;  %v1465_v40 = vor.u32 %v1464_v60, %v1463_v55 }
  0x56   : > { %3350 = vmatmul.mubr.bf16.gmra.mrb[24].mxu0 %v867_v0  ;;  %3441 = vmatprep.subr.bf16.mxu1 %v3813_v1  ;;  %v3744_v0 = vld [vmem:[%s4790_s3 + $0x180] sm:$0xff]  }
  0x57   : > { %3386 = vmatmul.mubr.bf16.gmra.mrb[24].mxu1 %v1103_v4  ;;  %3406 = vmatpush3.bf16.msra.mxu0 %v3723_v63  ;;  %v1462_v63 = vor.u32 %v1461_v59, %v1458_v58  ;;  %v1468_v4 = vrot.slane %v1100_v53, 2  ;;  %v1288_v30 = vsel %vm1285_vm3, %v1286_v52, %v1287_v62  ;;  %v3748_v53 = vld [vmem:[%s4790_s3 + $0x1c8] sm:$0xff]   ;;  %v1290_v6 = vsel %vm1285_vm3, %v1287_v62, %v1289_v2  ;;  %v4360_v59 = vld [vmem:[%s3926_s21 + $0x1c] sm:$0xff]  }
  0x58   : > { %3353 = vmatprep.mubr.msk.bf16.mxu0 %vm3814_vm0, %v3813_v1  ;;  %3407 = vmatprep.subr.bf16.mxu0 %v3813_v1  ;;  %v1694_v58 = vrot.slane %v1692_v48, 2  ;;  %v4363_v52 = vcombine.low %v1869_v51, %v1625_v34 }
  0x59   : > { %3389 = vmatprep.mubr.msk.bf16.mxu1 %vm3814_vm0, %v3813_v1  ;;  %3442 = vmatpush3.bf16.msra.mxu1 %v3729_v7  ;;  %v3747_v7 = vld [vmem:[%s4790_s3 + $0x1c0] sm:$0xff]   ;;  %v1466_v9 = vsel %vm1454_vm4, %v1462_v63, %v1465_v40  ;;  %v1469_v5 = vor.u32 %v1468_v4, %v1467_v3  ;;  %v1892_v3 = vrot.slane %v4327_v37, 2 }
  0x5a   : > { %3443 = vmatprep.subr.bf16.mxu1 %v3813_v1  ;;  %v1891_v2 = vrot.slane %v4363_v52, 2 }
  0x5b   : > { %3408 = vmatpush3.bf16.msra.mxu0 %v3727_v10  ;;  %v1471_v10 = vrot.slane %v1112_v22, 1  ;;  %v1470_v13 = vsel %vm1454_vm4, %v1465_v40, %v1469_v5  ;;  %v1475_v22 = vrot.slane %v1120_v41, 1  ;;  %v1698_v40 = vshrl.u32 %v4360_v59, 16 }
  0x5c   : > { %3409 = vmatprep.subr.bf16.mxu0 %v3813_v1 }
  0x5d   : > { %3444 = vmatpush3.bf16.msra.mxu1 %v3731_v15  ;;  %v3749_v15 = vld [vmem:[%s4790_s3 + $0x198] sm:$0xff]  }
  0x5e   : > { %3354 = vmatmul.mubr.bf16.gmra.mrb[28].mxu0 %v875_v16  ;;  %3445 = vmatprep.subr.bf16.mxu1 %v3813_v1  ;;  %v1473_v16 = vor.u32 %v1472_v11, %v1471_v10  ;;  %v1893_v10 = vsel %vm1890_vm5, %v1891_v2, %v1892_v3  ;;  %v3765_v11 = vld [vmem:[%s4790_s3 + $0x208] sm:$0xff]  }
  0x5f   : > { %3390 = vmatmul.mubr.bf16.gmra.mrb[28].mxu1 %v1111_v21  ;;  %3410 = vmatpush3.bf16.msra.mxu0 %v3730_v18  ;;  %v3752_v18 = vld [vmem:[%s4790_s3 + $0x1d8] sm:$0xff]  }
  0x60   : > { %3357 = vmatprep.mubr.msk.bf16.mxu0 %vm3814_vm0, %v3813_v1  ;;  %3393 = vmatprep.mubr.msk.bf16.mxu1 %vm3814_vm0, %v3813_v1  ;;  %v1474_v21 = vsel %vm1454_vm4, %v1469_v5, %v1473_v16 }
  0x61   : > { %3411 = vmatprep.subr.bf16.mxu0 %v3813_v1  ;;  %3446 = vmatpush3.bf16.msra.mxu1 %v3735_v24  ;;  %v1476_v24 = vrot.slane %v1116_v23, 2 }
  0x62   : > { %3447 = vmatprep.subr.bf16.mxu1 %v3813_v1 }
  0x63   : > { %3412 = vmatpush3.bf16.msra.mxu0 %v3734_v25  ;;  %v3757_v25 = vld [vmem:[%s3926_s21 + $0x30] ss:$0 sps:$4 sm:$0x33]   ;;  %v1477_v23 = vor.u32 %v1476_v24, %v1475_v22 }
  0x64   : > { %3413 = vmatprep.subr.bf16.mxu0 %v3813_v1  ;;  %v1480_v31 = vshrl.u32 %v3757_v25, 16  ;;  %v1483_v32 = vshll.u32 %v3757_v25, 16 }
  0x65   : > { %3448 = vmatpush3.bf16.msra.mxu1 %v3737_v33  ;;  %v1624_v33 = vld [vmem:[%s3926_s21 + $0xc] sm:$0xe] }
  0x66   : > { %3358 = vmatmul.mubr.bf16.gmra.mrb[32].mxu0 %v883_v35  ;;  %3449 = vmatprep.subr.bf16.mxu1 %v3813_v1  ;;  %v1294_v35 = vsel %vm1285_vm3, %v1291_v8, %v1293_v27  ;;  %v3017_v36 = vcombine.low %v1624_v33, %v1625_v34  ;;  %v1482_v41 = vrot.slane %v1480_v31, 1  ;;  %v1485_v42 = vrot.slane %v1483_v32, 2  ;;  %v3772_v33 = vld [vmem:[%s4790_s3 + $0x228] sm:$0xff]  }
  0x67   : > { %3394 = vmatmul.mubr.bf16.gmra.mrb[32].mxu1 %v1119_v38  ;;  %3361 = vmatprep.mubr.msk.bf16.mxu0 %vm3814_vm0, %v3813_v1  ;;  %v1478_v38 = vsel %vm1454_vm4, %v1473_v16, %v1477_v23  ;;  %v4407_v16 = vld [vmem:[%s3926_s21 + $0x2c] sm:$0xff]  }
  0x68   : > { %3414 = vmatpush3.bf16.msra.mxu0 %v3736_v39  ;;  %3397 = vmatprep.mubr.msk.bf16.mxu1 %vm3814_vm0, %v3813_v1  ;;  %v3755_v39 = vld [vmem:[%s4790_s3 + $0x1b0] sm:$0xff]   ;;  %v1681_v45 = vshrl.u32 %v3017_v36, 16  ;;  %v1684_v47 = vshll.u32 %v3017_v36, 16  ;;  %v1719_v22 = vshll.u32 %v4407_v16, 16 }
  0x69   : > { %3415 = vmatprep.subr.bf16.mxu0 %v3813_v1  ;;  %3450 = vmatpush3.bf16.msra.mxu1 %v3740_v44  ;;  %v1295_v44 = vrot.slane %v4187_v29, 1  ;;  %v3759_v29 = vld [vmem:[%s4790_s3 + $0x1b8] sm:$0xff]  }
  0x6a   : > { %3451 = vmatprep.subr.bf16.mxu1 %v3813_v1  ;;  %v1683_v55 = vrot.slane %v1681_v45, 1  ;;  %v2064_v45 = vshll.u32 %v4363_v52, 16  ;;  %v2081_v2 = vrot.slane %v1719_v22, 3 }
  0x6c   : > { %3416 = vmatpush3.bf16.msra.mxu0 %v3741_v49  ;;  %v1486_v49 = vor.u32 %v1485_v42, %v1482_v41  ;;  %v3773_v42 = vld [vmem:[%s4790_s3 + $0x230] sm:$0xff]   ;;  %v2066_v51 = vrot.slane %v2064_v45, 3 }
  0x6d   : > { %3452 = vmatpush3.bf16.msra.mxu1 %v3742_v54  ;;  %3473 = vmatprep.subr.bf16.mxu0 %v3813_v1  ;;  %v1296_v54 = vsel %vm1285_vm3, %v1293_v27, %v1295_v44 }
  0x6e   : > { %3362 = vmatmul.mubr.bf16.gmra.mrb[36].mxu0 %v891_v56  ;;  %3509 = vmatprep.subr.bf16.mxu1 %v3813_v1  ;;  %v1686_v56 = vrot.slane %v1684_v47, 2  ;;  %v1487_v60 = vsel %vm1454_vm4, %v1477_v23, %v1486_v49  ;;  %v3774_v23 = vld [vmem:[%s3926_s21 + $0x34] ss:$0 sps:$4 sm:$0x33]   ;;  %v3775_v49 = vld [vmem:[%s4790_s3 + $0x238] sm:$0xff]  }
  0x6f   : > { %3398 = vmatmul.mubr.bf16.gmra.mrb[36].mxu1 %v1127_v57  ;;  %3417 = vmatprep.mubr.msk.bf16.mxu0 %vm3814_vm0, %v3813_v1  ;;  %v1691_v57 = vrot.slane %v1689_v17, 1  ;;  %v1725_v34 = vshrl.u32 %v3774_v23, 16  ;;  %v1900_v47 = vrot.slane %v3774_v23, 2 }
  0x70   : > { %3453 = vmatprep.mubr.msk.bf16.mxu1 %vm3814_vm0, %v3813_v1  ;;  %v1687_v62 = vor.u32 %v1686_v56, %v1683_v55  ;;  %v2069_v55 = vrot.slane %v1692_v48, 3 }
  0x71   : > { %v1695_v63 = vor.u32 %v1694_v58, %v1691_v57 }
  0x73   : > { %v1696_v4 = vsel %vm1454_vm4, %v1687_v62, %v1695_v63 }
  0x76   : > { %3418 = vmatmul.mubr.bf16.vlgmr.msra.gmra.mrb[40].mxu0 %v1288_v30  ;;  %v3763_v30 = vld [vmem:[%s4790_s3 + $0x200] sm:$0xff]  }
  0x77   : > { %3474 = vmatpush3.bf16.msra.mxu0 %v3744_v0  ;;  %3454 = vmatmul.mubr.bf16.vlgmr.msra.gmra.mrb[40].mxu1 %v1466_v9  ;;  %v1701_v0 = vshll.u32 %v4360_v59, 16  ;;  %v4384_v9 = vld [vmem:[%s3926_s21 + $0x24] sm:$0xff]  }
  0x78   : > { %3475 = vmatprep.subr.bf16.mxu0 %v3813_v1  ;;  %3421 = vmatprep.mubr.msk.bf16.mxu0 %vm3814_vm0, %v3813_v1  ;;  %v1710_v5 = vshll.u32 %v4384_v9, 16  ;;  %v1896_v24 = vrot.slane %v4384_v9, 2 }
  0x79   : > { %3457 = vmatprep.mubr.msk.bf16.mxu1 %vm3814_vm0, %v3813_v1  ;;  %3510 = vmatpush3.bf16.msra.mxu1 %v3747_v7  ;;  %v1700_v7 = vrot.slane %v1698_v40, 1  ;;  %v1703_v8 = vrot.slane %v1701_v0, 2  ;;  %v2073_v48 = vrot.slane %v1701_v0, 3 }
  0x7a   : > { %3511 = vmatprep.subr.bf16.mxu1 %v3813_v1 }
  0x7b   : > { %3476 = vmatpush3.bf16.msra.mxu0 %v3745_v46  ;;  %v1704_v46 = vor.u32 %v1703_v8, %v1700_v7 }
  0x7c   : > { %3477 = vmatprep.subr.bf16.mxu0 %v3813_v1 }
  0x7d   : > { %3512 = vmatpush3.bf16.msra.mxu1 %v3748_v53  ;;  %v1707_v53 = vshrl.u32 %v4384_v9, 16 }
  0x7e   : > { %3422 = vmatmul.mubr.bf16.gmra.mrb[44].mxu0 %v1290_v6  ;;  %3513 = vmatprep.subr.bf16.mxu1 %v3813_v1  ;;  %v1705_v6 = vsel %vm1454_vm4, %v1695_v63, %v1704_v46  ;;  %v2077_v63 = vrot.slane %v1710_v5, 3 }
  0x7f   : > { %3458 = vmatmul.mubr.bf16.gmra.mrb[44].mxu1 %v1470_v13  ;;  %3478 = vmatpush3.bf16.msra.mxu0 %v3746_v61  ;;  %v1894_v61 = vrot.slane %v4360_v59, 2  ;;  %v1709_v13 = vrot.slane %v1707_v53, 1  ;;  %v2076_v62 = vrot.slane %v1707_v53, 2 }
  0x80   : > { %3425 = vmatprep.mubr.msk.bf16.mxu0 %vm3814_vm0, %v3813_v1  ;;  %3479 = vmatprep.subr.bf16.mxu0 %v3813_v1 }
  0x81   : > { %3461 = vmatprep.mubr.msk.bf16.mxu1 %vm3814_vm0, %v3813_v1  ;;  %3514 = vmatpush3.bf16.msra.mxu1 %v3750_v12  ;;  %v3767_v12 = vld [vmem:[%s4790_s3 + $0x210] sm:$0xff]   ;;  %v1897_v31 = vsel %vm1890_vm5, %v1894_v61, %v1896_v24 }
  0x82   : > { %3515 = vmatprep.subr.bf16.mxu1 %v3813_v1 }
  0x83   : > { %3480 = vmatpush3.bf16.msra.mxu0 %v3749_v15  ;;  %v1712_v15 = vrot.slane %v1710_v5, 2 }
  0x84   : > { %3481 = vmatprep.subr.bf16.mxu0 %v3813_v1 }
  0x85   : > { %3516 = vmatpush3.bf16.msra.mxu1 %v3752_v18  ;;  %v1895_v18 = vsel %vm1890_vm5, %v1892_v3, %v1894_v61  ;;  %v3776_v3 = vld [vmem:[%s3926_s21 + $0x34] ss:$0 sps:$4 sm:$0x77]  }
  0x86   : > { %3426 = vmatmul.mubr.bf16.gmra.mrb[48].mxu0 %v1292_v19  ;;  %3517 = vmatprep.subr.bf16.mxu1 %v3813_v1  ;;  %v1713_v19 = vor.u32 %v1712_v15, %v1709_v13  ;;  %v2088_v7 = vshll.u32 %v3776_v3, 16 }
  0x87   : > { %3462 = vmatmul.mubr.bf16.gmra.mrb[48].mxu1 %v1474_v21  ;;  %3482 = vmatpush3.bf16.msra.mxu0 %v3751_v20  ;;  %v3769_v20 = vld [vmem:[%s4790_s3 + $0x218] sm:$0xff]   ;;  %v1716_v21 = vshrl.u32 %v4407_v16, 16 }
  0x88   : > { %3429 = vmatprep.mubr.msk.bf16.mxu0 %vm3814_vm0, %v3813_v1  ;;  %3465 = vmatprep.mubr.msk.bf16.mxu1 %vm3814_vm0, %v3813_v1  ;;  %v1714_v25 = vsel %vm1454_vm4, %v1704_v46, %v1713_v19 }
  0x89   : > { %3483 = vmatprep.subr.bf16.mxu0 %v3813_v1  ;;  %3518 = vmatpush3.bf16.msra.mxu1 %v3754_v26  ;;  %v3770_v26 = vld [vmem:[%s4790_s3 + $0x220] sm:$0xff]   ;;  %v1718_v27 = vrot.slane %v1716_v21, 1  ;;  %v2080_v0 = vrot.slane %v1716_v21, 2 }
  0x8a   : > { %3519 = vmatprep.subr.bf16.mxu1 %v3813_v1 }
  0x8b   : > { %3484 = vmatpush3.bf16.msra.mxu0 %v3753_v28  ;;  %v1721_v28 = vrot.slane %v1719_v22, 2 }
  0x8c   : > { %3485 = vmatprep.subr.bf16.mxu0 %v3813_v1 }
  0x8d   : > { %3520 = vmatpush3.bf16.msra.mxu1 %v3756_v14  ;;  %v1722_v32 = vor.u32 %v1721_v28, %v1718_v27  ;;  %v1728_v14 = vshll.u32 %v3774_v23, 16 }
  0x8e   : > { %3430 = vmatmul.mubr.bf16.gmra.mrb[52].mxu0 %v1294_v35  ;;  %3521 = vmatprep.subr.bf16.mxu1 %v3813_v1  ;;  %v1898_v35 = vrot.slane %v4407_v16, 2 }
  0x8f   : > { %3466 = vmatmul.mubr.bf16.gmra.mrb[52].mxu1 %v1478_v38  ;;  %3433 = vmatprep.mubr.msk.bf16.mxu0 %vm3814_vm0, %v3813_v1  ;;  %v1723_v36 = vsel %vm1454_vm4, %v1713_v19, %v1722_v32  ;;  %v1727_v38 = vrot.slane %v1725_v34, 1  ;;  %v3779_v34 = vld [vmem:[%s4792_s5 + $0x10] sm:$0xff]  }
  0x90   : > { %3486 = vmatpush3.bf16.msra.mxu0 %v3755_v39  ;;  %3469 = vmatprep.mubr.msk.bf16.mxu1 %vm3814_vm0, %v3813_v1  ;;  %v1730_v39 = vrot.slane %v1728_v14, 2  ;;  %v1899_v41 = vsel %vm1890_vm5, %v1896_v24, %v1898_v35  ;;  %v1901_v56 = vsel %vm1890_vm5, %v1898_v35, %v1900_v47 }
  0x91   : > { %3487 = vmatprep.subr.bf16.mxu0 %v3813_v1  ;;  %3522 = vmatpush3.bf16.msra.mxu1 %v3758_v43  ;;  %v2061_v43 = vshrl.u32 %v4363_v52, 16 }
  0x92   : > { %3523 = vmatprep.subr.bf16.mxu1 %v3813_v1  ;;  %v1731_v44 = vor.u32 %v1730_v39, %v1727_v38 }
  0x94   : > { %3488 = vmatpush3.bf16.msra.mxu0 %v3759_v29  ;;  %v2063_v29 = vrot.slane %v2061_v43, 2 }
  0x95   : > { %3524 = vmatpush3.bf16.msra.mxu1 %v3760_v50  ;;  %3545 = vmatprep.subr.bf16.mxu0 %v3813_v1  ;;  %v1732_v50 = vsel %vm1454_vm4, %v1722_v32, %v1731_v44  ;;  %v3780_v44 = vld [vmem:[%s4792_s5 + $0x18] sm:$0xff]  }
  0x96   : > { %3434 = vmatmul.mubr.bf16.gmra.mrb[56].mxu0 %v1296_v54  ;;  %3581 = vmatprep.subr.bf16.mxu1 %v3813_v1  ;;  %v2068_v54 = vrot.slane %v1689_v17, 2  ;;  %v2067_v57 = vor.u32 %v2066_v51, %v2063_v29  ;;  %v2072_v17 = vrot.slane %v1698_v40, 2  ;;  %v2078_v40 = vor.u32 %v2077_v63, %v2076_v62  ;;  %v3781_v51 = vld [vmem:[%s4792_s5 + $0x20] sm:$0xff]  }
  0x97   : > { %3470 = vmatmul.mubr.bf16.gmra.mrb[56].mxu1 %v1487_v60  ;;  %3489 = vmatprep.mubr.msk.bf16.mxu0 %vm3814_vm0, %v3813_v1 }
  0x98   : > { %3525 = vmatprep.mubr.msk.bf16.mxu1 %vm3814_vm0, %v3813_v1  ;;  %v2070_v58 = vor.u32 %v2069_v55, %v2068_v54  ;;  %v2074_v60 = vor.u32 %v2073_v48, %v2072_v17  ;;  %v3782_v48 = vld [vmem:[%s4792_s5 + $0x28] sm:$0xff]  }
  0x9a   : > { %v2071_v37 = vsel %vm2059_vm6, %v2067_v57, %v2070_v58  ;;  %v2075_v52 = vsel %vm2059_vm6, %v2070_v58, %v2074_v60  ;;  %v2079_v59 = vsel %vm2059_vm6, %v2074_v60, %v2078_v40 }
  0x9e   : > { %3490 = vmatmul.mubr.bf16.vlgmr.msra.gmra.mrb[60].mxu0 %v1696_v4  ;;  %v2082_v4 = vor.u32 %v2081_v2, %v2080_v0 }
  0x9f   : > { %3546 = vmatpush3.bf16.msra.mxu0 %v3763_v30  ;;  %3526 = vmatmul.mubr.bf16.vlgmr.msra.gmra.mrb[60].mxu1 %v1893_v10  ;;  %v2085_v30 = vshrl.u32 %v3776_v3, 16  ;;  %v2090_v10 = vrot.slane %v2088_v7, 3  ;;  %v3783_v3 = vld [vmem:[%s4792_s5 + $0x30] sm:$0xff]   ;;  %v3784_v7 = vld [vmem:[%s4792_s5 + $0x38] sm:$0xff]  }
  0xa0   : > { %3547 = vmatprep.subr.bf16.mxu0 %v3813_v1  ;;  %3493 = vmatprep.mubr.msk.bf16.mxu0 %vm3814_vm0, %v3813_v1  ;;  %v2083_v8 = vsel %vm2059_vm6, %v2078_v40, %v2082_v4 }
  0xa1   : > { %3529 = vmatprep.mubr.msk.bf16.mxu1 %vm3814_vm0, %v3813_v1  ;;  %v2087_v9 = vrot.slane %v2085_v30, 2 }
  0xa3   : > { %3548 = vmatpush3.bf16.msra.mxu0 %v3765_v11  ;;  %v2091_v11 = vor.u32 %v2090_v10, %v2087_v9 }
  0xa4   : > { %3549 = vmatprep.subr.bf16.mxu0 %v3813_v1 }
  0xa5   : > { %v2092_v46 = vsel %vm2059_vm6, %v2082_v4, %v2091_v11 }
  0xa6   : > { %3494 = vmatmul.mubr.bf16.gmra.mrb[64].mxu0 %v1705_v6 }
  0xa7   : > { %3530 = vmatmul.mubr.bf16.gmra.mrb[64].mxu1 %v1895_v18  ;;  %3550 = vmatpush3.bf16.msra.mxu0 %v3767_v12 }
  0xa8   : > { %3497 = vmatprep.mubr.msk.bf16.mxu0 %vm3814_vm0, %v3813_v1  ;;  %3551 = vmatprep.subr.bf16.mxu0 %v3813_v1 }
  0xa9   : > { %3533 = vmatprep.mubr.msk.bf16.mxu1 %vm3814_vm0, %v3813_v1 }
  0xab   : > { %3552 = vmatpush3.bf16.msra.mxu0 %v3769_v20  ;;  %v3777_v20 = vld [vmem:[%s4792_s5] sm:$0xff]  }
  0xac   : > { %3553 = vmatprep.subr.bf16.mxu0 %v3813_v1  ;;  %3582 = vmatpush3.bf16.msra.mxu1 %v3777_v20 }
  0xad   : > { %3583 = vmatprep.subr.bf16.mxu1 %v3813_v1 }
  0xae   : > { %3498 = vmatmul.mubr.bf16.gmra.mrb[68].mxu0 %v1714_v25  ;;  %v3778_v25 = vld [vmem:[%s4792_s5 + $0x8] sm:$0xff]  }
  0xaf   : > { %3534 = vmatmul.mubr.bf16.gmra.mrb[68].mxu1 %v1897_v31  ;;  %3554 = vmatpush3.bf16.msra.mxu0 %v3770_v26 }
  0xb0   : > { %3501 = vmatprep.mubr.msk.bf16.mxu0 %vm3814_vm0, %v3813_v1  ;;  %3537 = vmatprep.mubr.msk.bf16.mxu1 %vm3814_vm0, %v3813_v1 }
  0xb1   : > { %3555 = vmatprep.subr.bf16.mxu0 %v3813_v1  ;;  %3584 = vmatpush3.bf16.msra.mxu1 %v3778_v25 }
  0xb2   : > { %3585 = vmatprep.subr.bf16.mxu1 %v3813_v1 }
  0xb3   : > { %3556 = vmatpush3.bf16.msra.mxu0 %v3772_v33 }
  0xb4   : > { %3557 = vmatprep.subr.bf16.mxu0 %v3813_v1 }
  0xb5   : > { %3586 = vmatpush3.bf16.msra.mxu1 %v3779_v34 }
  0xb6   : > { %3502 = vmatmul.mubr.bf16.gmra.mrb[72].mxu0 %v1723_v36  ;;  %3587 = vmatprep.subr.bf16.mxu1 %v3813_v1 }
  0xb7   : > { %3538 = vmatmul.mubr.bf16.gmra.mrb[72].mxu1 %v1899_v41  ;;  %3505 = vmatprep.mubr.msk.bf16.mxu0 %vm3814_vm0, %v3813_v1 }
  0xb8   : > { %3558 = vmatpush3.bf16.msra.mxu0 %v3773_v42  ;;  %3541 = vmatprep.mubr.msk.bf16.mxu1 %vm3814_vm0, %v3813_v1 }
  0xb9   : > { %3559 = vmatprep.subr.bf16.mxu0 %v3813_v1  ;;  %3588 = vmatpush3.bf16.msra.mxu1 %v3780_v44 }
  0xba   : > { %3589 = vmatprep.subr.bf16.mxu1 %v3813_v1 }
  0xbc   : > { %3560 = vmatpush3.bf16.msra.mxu0 %v3775_v49 }
  0xbd   : > { %3617 = vmatprep.subr.bf16.mxu0 %v3813_v1  ;;  %3590 = vmatpush3.bf16.msra.mxu1 %v3781_v51 }
  0xbe   : > { %3506 = vmatmul.mubr.bf16.gmra.mrb[76].mxu0 %v1732_v50  ;;  %3591 = vmatprep.subr.bf16.mxu1 %v3813_v1 }
  0xbf   : > { %3542 = vmatmul.mubr.bf16.gmra.mrb[76].mxu1 %v1901_v56  ;;  %3561 = vmatprep.mubr.msk.bf16.mxu0 %vm3814_vm0, %v3813_v1 }
  0xc0   : > { %3597 = vmatprep.mubr.msk.bf16.mxu1 %vm3814_vm0, %v3813_v1 }
  0xc1   : > { %3592 = vmatpush3.bf16.msra.mxu1 %v3782_v48 }
  0xc2   : > { %3593 = vmatprep.subr.bf16.mxu1 %v3813_v1 }
  0xc5   : > { %3594 = vmatpush3.bf16.msra.mxu1 %v3783_v3 }
  0xc6   : > { %3562 = vmatmul.mubr.bf16.vlgmr.msra.gmra.mrb[80].mxu0 %v2071_v37  ;;  %3595 = vmatprep.subr.bf16.mxu1 %v3813_v1 }
  0xc7   : > { %3565 = vmatprep.mubr.msk.bf16.mxu0 %vm3814_vm0, %v3813_v1 }
  0xc9   : > { %3596 = vmatpush3.bf16.msra.mxu1 %v3784_v7 }
  0xca   : > { %3637 = vmatprep.subr.bf16.mxu1 %v3813_v1 }
  0xce   : > { %3566 = vmatmul.mubr.bf16.gmra.mrb[84].mxu0 %v2075_v52 }
  0xcf   : > { %3569 = vmatprep.mubr.msk.bf16.mxu0 %vm3814_vm0, %v3813_v1 }
  0xd6   : > { %3570 = vmatmul.mubr.bf16.gmra.mrb[88].mxu0 %v2079_v59 }
  0xd7   : > { %3573 = vmatprep.mubr.msk.bf16.mxu0 %vm3814_vm0, %v3813_v1 }
  0xde   : > { %3574 = vmatmul.mubr.bf16.gmra.mrb[92].mxu0 %v2083_v8 }
  0xdf   : > { %3577 = vmatprep.mubr.msk.bf16.mxu0 %vm3814_vm0, %v3813_v1 }
  0xe6   : > { %3578 = vmatmul.mubr.bf16.gmra.mrb[96].mxu0 %v2092_v46 }
  0xe7   : > { %3633 = vmatprep.mubr.msk.bf16.mxu0 %vm3814_vm0, %v3813_v1 }
  0xf9   : > { %v564_v53 = vpop.f32.mrb[0].mxu0 }
  0xfa   : > { %v752_v5 = vpop.f32.mrb[0].mxu1  ;;  %v3275_v61 = vpop.f32.mrb[1].mxu0 }
  0xfb   : > { %v4497_v6 = vadd.f32 %v752_v5, %v564_v53  ;;  %v3311_v12 = vpop.f32.mrb[1].mxu1  ;;  %v567_v13 = vpop.f32.mrb[2].mxu0 }
  0xfc   : > { %v755_v15 = vpop.f32.mrb[2].mxu1  ;;  %v3276_v16 = vpop.f32.mrb[3].mxu0 }
  0xfd   : > { %v4499_v18 = vadd.f32 %v755_v15, %v567_v13  ;;  %v3312_v19 = vpop.f32.mrb[3].mxu1 }
 0x101   : > { %v572_v21 = vpop.f32.mrb[4].mxu0 }
 0x102   : > { %v760_v22 = vpop.f32.mrb[4].mxu1  ;;  %v3279_v24 = vpop.f32.mrb[5].mxu0 }
 0x103   : > { %v4508_v26 = vadd.f32 %v760_v22, %v572_v21  ;;  %v3315_v27 = vpop.f32.mrb[5].mxu1  ;;  %v575_v28 = vpop.f32.mrb[6].mxu0 }
 0x104   : > { %v763_v23 = vpop.f32.mrb[6].mxu1  ;;  %v3280_v31 = vpop.f32.mrb[7].mxu0 }
 0x105   : > { %v4510_v32 = vadd.f32 %v763_v23, %v575_v28  ;;  %v3316_v33 = vpop.f32.mrb[7].mxu1 }
 0x109   : > { %v580_v14 = vpop.f32.mrb[8].mxu0 }
 0x10a   : > { %v768_v35 = vpop.f32.mrb[8].mxu1  ;;  %v3283_v36 = vpop.f32.mrb[9].mxu0 }
 0x10b   : > { %v4517_v38 = vadd.f32 %v768_v35, %v580_v14  ;;  %v3319_v39 = vpop.f32.mrb[9].mxu1  ;;  %v583_v41 = vpop.f32.mrb[10].mxu0 }
 0x10c   : > { %v771_v42 = vpop.f32.mrb[10].mxu1  ;;  %v3284_v43 = vpop.f32.mrb[11].mxu0 }
 0x10d   : > { %v4522_v45 = vadd.f32 %v771_v42, %v583_v41  ;;  %v3320_v47 = vpop.f32.mrb[11].mxu1 }
 0x111   : > { %v588_v49 = vpop.f32.mrb[12].mxu0 }
 0x112   : > { %v776_v29 = vpop.f32.mrb[12].mxu1  ;;  %v3287_v50 = vpop.f32.mrb[13].mxu0 }
 0x113   : > { %v4528_v54 = vadd.f32 %v776_v29, %v588_v49  ;;  %v3323_v55 = vpop.f32.mrb[13].mxu1  ;;  %v591_v56 = vpop.f32.mrb[14].mxu0 }
 0x114   : > { %v779_v57 = vpop.f32.mrb[14].mxu1  ;;  %v3288_v58 = vpop.f32.mrb[15].mxu0 }
 0x115   : > { %v4530_v37 = vadd.f32 %v779_v57, %v591_v56  ;;  %v3324_v17 = vpop.f32.mrb[15].mxu1 }
 0x119   : > { %v596_v60 = vpop.f32.mrb[16].mxu0 }
 0x11a   : > { %v784_v52 = vpop.f32.mrb[16].mxu1  ;;  %v3291_v62 = vpop.f32.mrb[17].mxu0 }
 0x11b   : > { %v785_v63 = vadd.f32 %v784_v52, %v596_v60  ;;  %v3327_v40 = vpop.f32.mrb[17].mxu1  ;;  %v599_v59 = vpop.f32.mrb[18].mxu0 }
 0x11c   : > { %v787_v0 = vpop.f32.mrb[18].mxu1  ;;  %v3292_v2 = vpop.f32.mrb[19].mxu0 }
 0x11d   : > { %v788_v4 = vadd.f32 %v787_v0, %v599_v59  ;;  %v3328_v30 = vpop.f32.mrb[19].mxu1 }
 0x11e   : > { %v2417_v30 = vld [vmem:[%s4789_s2 + $0x10] sm:$0xff] }
 0x121   : > { %v979_v8 = vpop.f32.mrb[20].mxu0 }
 0x122   : > { %v1018_v9 = vadd.f32 %v979_v8, %v4497_v6  ;;  %v3347_v10 = vpop.f32.mrb[21].mxu0  ;;  %v1215_v11 = vpop.f32.mrb[20].mxu1  ;;  %v3815_v8 = vmov 0  }
 0x123   : > { %v982_v46 = vpop.f32.mrb[22].mxu0  ;;  %v3383_v53 = vpop.f32.mrb[21].mxu1  ;;  %3670 = vset.pattern.permute.xlu0 %v3815_v8  ;;  %3671 = vset.pattern.permute.xlu1 %v3815_v8 }
 0x124   : > { %v1019_v5 = vadd.f32 %v982_v46, %v4499_v18  ;;  %v4547_v61 = vadd.f32 %v1215_v11, %v1018_v9  ;;  %v3348_v12 = vpop.f32.mrb[23].mxu0  ;;  %v1218_v13 = vpop.f32.mrb[22].mxu1  ;;  %2437 = vperm.xlu1 %3671, %v2417_v30   ;;  %v2418_v9 = vld [vmem:[%s4789_s2 + $0x18] sm:$0xff] }
 0x125   : > { %v3384_v15 = vpop.f32.mrb[23].mxu1 }
 0x126   : > { %v4549_v16 = vadd.f32 %v1218_v13, %v1019_v5  ;;  %v2419_v13 = vld [vmem:[%s4789_s2 + $0x20] sm:$0xff]  ;;  %v2420_v15 = vld [vmem:[%s4789_s2 + $0x28] sm:$0xff] }
 0x128   : > { %2442 = vperm.xlu1 %3671, %v2418_v9  }
 0x129   : > { %v987_v19 = vpop.f32.mrb[24].mxu0 }
 0x12a   : > { %v1020_v20 = vadd.f32 %v987_v19, %v4508_v26  ;;  %v3351_v6 = vpop.f32.mrb[25].mxu0  ;;  %v1223_v21 = vpop.f32.mrb[24].mxu1 }
 0x12b   : > { %v990_v22 = vpop.f32.mrb[26].mxu0  ;;  %v3387_v24 = vpop.f32.mrb[25].mxu1 }
 0x12c   : > { %v1021_v25 = vadd.f32 %v990_v22, %v4510_v32  ;;  %v4553_v27 = vadd.f32 %v1223_v21, %v1020_v20  ;;  %v3352_v28 = vpop.f32.mrb[27].mxu0  ;;  %v1226_v18 = vpop.f32.mrb[26].mxu1  ;;  %2452 = vperm.xlu1 %3671, %v2420_v15   ;;  %v2421_v24 = vld [vmem:[%s4789_s2 + $0x30] sm:$0xff] }
 0x12d   : > { %v3388_v23 = vpop.f32.mrb[27].mxu1 }
 0x12e   : > { %v4555_v31 = vadd.f32 %v1226_v18, %v1021_v25  ;;  %v2422_v25 = vld [vmem:[%s4789_s2 + $0x38] sm:$0xff] }
 0x130   : > { %2462 = vperm.xlu1 %3671, %v2422_v25  }
 0x131   : > { %v995_v33 = vpop.f32.mrb[28].mxu0 }
 0x132   : > { %v1022_v34 = vadd.f32 %v995_v33, %v4517_v38  ;;  %v3355_v14 = vpop.f32.mrb[29].mxu0  ;;  %v1231_v35 = vpop.f32.mrb[28].mxu1 }
 0x133   : > { %v998_v36 = vpop.f32.mrb[30].mxu0  ;;  %v3391_v26 = vpop.f32.mrb[29].mxu1  ;;  %v2423_v14 = vld [vmem:[%s4789_s2 + $0x40] sm:$0xff] }
 0x134   : > { %v1023_v39 = vadd.f32 %v998_v36, %v4522_v45  ;;  %v4559_v41 = vadd.f32 %v1231_v35, %v1022_v34  ;;  %v3356_v42 = vpop.f32.mrb[31].mxu0  ;;  %v1234_v32 = vpop.f32.mrb[30].mxu1  ;;  %v2424_v35 = vld [vmem:[%s4789_s2 + $0x48] sm:$0xff] }
 0x135   : > { %v3392_v43 = vpop.f32.mrb[31].mxu1  ;;  %2472 = vperm.xlu1 %3671, %v2424_v35  }
 0x136   : > { %v4561_v44 = vadd.f32 %v1234_v32, %v1023_v39 }
 0x139   : > { %v1003_v47 = vpop.f32.mrb[32].mxu0 }
 0x13a   : > { %v1024_v49 = vadd.f32 %v1003_v47, %v4528_v54  ;;  %v3359_v29 = vpop.f32.mrb[33].mxu0  ;;  %v1239_v50 = vpop.f32.mrb[32].mxu1 }
 0x13b   : > { %v1006_v51 = vpop.f32.mrb[34].mxu0  ;;  %v3395_v38 = vpop.f32.mrb[33].mxu1 }
 0x13c   : > { %v1025_v55 = vadd.f32 %v1006_v51, %v4530_v37  ;;  %v4565_v56 = vadd.f32 %v1239_v50, %v1024_v49  ;;  %v3360_v57 = vpop.f32.mrb[35].mxu0  ;;  %v1242_v45 = vpop.f32.mrb[34].mxu1  ;;  %v2415_v37 = vld [vmem:[%s4789_s2] sm:$0xff] }
 0x13d   : > { %v3396_v58 = vpop.f32.mrb[35].mxu1  ;;  %2427 = vperm.xlu0 %3670, %v2415_v37  }
 0x13e   : > { %v4567_v17 = vadd.f32 %v1242_v45, %v1025_v55 }
 0x141   : > { %v1011_v48 = vpop.f32.mrb[36].mxu0 }
 0x142   : > { %v1026_v60 = vadd.f32 %v1011_v48, %v785_v63  ;;  %v3363_v52 = vpop.f32.mrb[37].mxu0  ;;  %v1247_v62 = vpop.f32.mrb[36].mxu1 }
 0x143   : > { %v1014_v40 = vpop.f32.mrb[38].mxu0  ;;  %v3399_v59 = vpop.f32.mrb[37].mxu1 }
 0x144   : > { %v1027_v54 = vadd.f32 %v1014_v40, %v788_v4  ;;  %v4569_v0 = vadd.f32 %v1247_v62, %v1026_v60  ;;  %v3364_v2 = vpop.f32.mrb[39].mxu0  ;;  %v1250_v3 = vpop.f32.mrb[38].mxu1  ;;  %v2416_v4 = vld [vmem:[%s4789_s2 + $0x8] sm:$0xff] }
 0x145   : > { %v3400_v7 = vpop.f32.mrb[39].mxu1  ;;  %2432 = vperm.xlu0 %3670, %v2416_v4  }
 0x146   : > { %v4577_v63 = vadd.f32 %v1250_v3, %v1027_v54 }
 0x149   : > { %v1384_v10 = vpop.f32.mrb[40].mxu0  ;;  %2447 = vperm.xlu0 %3670, %v2419_v13  }
 0x14a   : > { %v1423_v11 = vadd.f32 %v1384_v10, %v4547_v61  ;;  %v3419_v46 = vpop.f32.mrb[41].mxu0  ;;  %v1575_v53 = vpop.f32.mrb[40].mxu1 }
 0x14b   : > { %v1387_v5 = vpop.f32.mrb[42].mxu0  ;;  %v3455_v12 = vpop.f32.mrb[41].mxu1 }
 0x14c   : > { %v1424_v19 = vadd.f32 %v1387_v5, %v4549_v16  ;;  %v4593_v20 = vadd.f32 %v1575_v53, %v1423_v11  ;;  %v3420_v6 = vpop.f32.mrb[43].mxu0  ;;  %v1578_v61 = vpop.f32.mrb[42].mxu1 }
 0x14d   : > { %v3456_v21 = vpop.f32.mrb[43].mxu1  ;;  %2457 = vperm.xlu0 %3670, %v2421_v24  }
 0x14e   : > { %v4595_v22 = vadd.f32 %v1578_v61, %v1424_v19 }
 0x151   : > { %v1392_v28 = vpop.f32.mrb[44].mxu0  ;;  %2467 = vperm.xlu0 %3670, %v2423_v14  }
 0x152   : > { %v1425_v16 = vadd.f32 %v1392_v28, %v4553_v27  ;;  %v3423_v18 = vpop.f32.mrb[45].mxu0  ;;  %v1583_v23 = vpop.f32.mrb[44].mxu1 }
 0x153   : > { %v1395_v33 = vpop.f32.mrb[46].mxu0  ;;  %v3459_v34 = vpop.f32.mrb[45].mxu1 }
 0x154   : > { %v1426_v36 = vadd.f32 %v1395_v33, %v4555_v31  ;;  %v1616_v26 = vadd.f32 %v1583_v23, %v1425_v16  ;;  %v3424_v39 = vpop.f32.mrb[47].mxu0  ;;  %v1586_v42 = vpop.f32.mrb[46].mxu1 }
 0x155   : > { %v3460_v27 = vpop.f32.mrb[47].mxu1 }
 0x156   : > { %v1617_v32 = vadd.f32 %v1586_v42, %v1426_v36 }
 0x159   : > { %v1400_v43 = vpop.f32.mrb[48].mxu0 }
 0x15a   : > { %v1427_v47 = vadd.f32 %v1400_v43, %v4559_v41  ;;  %v3427_v49 = vpop.f32.mrb[49].mxu0  ;;  %v1591_v29 = vpop.f32.mrb[48].mxu1 }
 0x15b   : > { %v1403_v50 = vpop.f32.mrb[50].mxu0  ;;  %v3463_v51 = vpop.f32.mrb[49].mxu1 }
 0x15c   : > { %v1428_v38 = vadd.f32 %v1403_v50, %v4561_v44  ;;  %v1618_v55 = vadd.f32 %v1591_v29, %v1427_v47  ;;  %v3428_v57 = vpop.f32.mrb[51].mxu0  ;;  %v1594_v45 = vpop.f32.mrb[50].mxu1 }
 0x15d   : > { %v3464_v31 = vpop.f32.mrb[51].mxu1 }
 0x15e   : > { %v1619_v58 = vadd.f32 %v1594_v45, %v1428_v38 }
 0x161   : > { %v1408_v48 = vpop.f32.mrb[52].mxu0 }
 0x162   : > { %v1429_v60 = vadd.f32 %v1408_v48, %v4565_v56  ;;  %v3431_v52 = vpop.f32.mrb[53].mxu0  ;;  %v1599_v62 = vpop.f32.mrb[52].mxu1 }
 0x163   : > { %v1411_v40 = vpop.f32.mrb[54].mxu0  ;;  %v3467_v59 = vpop.f32.mrb[53].mxu1 }
 0x164   : > { %v1430_v41 = vadd.f32 %v1411_v40, %v4567_v17  ;;  %v1620_v54 = vadd.f32 %v1599_v62, %v1429_v60  ;;  %v3432_v2 = vpop.f32.mrb[55].mxu0  ;;  %v1602_v3 = vpop.f32.mrb[54].mxu1 }
 0x165   : > { %v3468_v37 = vpop.f32.mrb[55].mxu1 }
 0x166   : > { %v1621_v30 = vadd.f32 %v1602_v3, %v1430_v41 }
 0x169   : > { %v1416_v44 = vpop.f32.mrb[56].mxu0 }
 0x16a   : > { %v1431_v7 = vadd.f32 %v1416_v44, %v4569_v0  ;;  %v3435_v8 = vpop.f32.mrb[57].mxu0  ;;  %v1607_v4 = vpop.f32.mrb[56].mxu1 }
 0x16b   : > { %v1419_v9 = vpop.f32.mrb[58].mxu0  ;;  %v3471_v10 = vpop.f32.mrb[57].mxu1 }
 0x16c   : > { %v1432_v56 = vadd.f32 %v1419_v9, %v4577_v63  ;;  %v1622_v11 = vadd.f32 %v1607_v4, %v1431_v7  ;;  %v3436_v46 = vpop.f32.mrb[59].mxu0  ;;  %v1610_v53 = vpop.f32.mrb[58].mxu1 }
 0x16d   : > { %v3472_v5 = vpop.f32.mrb[59].mxu1 }
 0x16e   : > { %v1623_v12 = vadd.f32 %v1610_v53, %v1432_v56 }
 0x171   : > { %v1820_v17 = vpop.f32.mrb[60].mxu0 }
 0x172   : > { %v1859_v13 = vadd.f32 %v1820_v17, %v4593_v20  ;;  %v3491_v15 = vpop.f32.mrb[61].mxu0  ;;  %v1989_v19 = vpop.f32.mrb[60].mxu1 }
 0x173   : > { %v1823_v6 = vpop.f32.mrb[62].mxu0  ;;  %v3527_v61 = vpop.f32.mrb[61].mxu1 }
 0x174   : > { %v1860_v0 = vadd.f32 %v1823_v6, %v4595_v22  ;;  %v2028_v21 = vadd.f32 %v1989_v19, %v1859_v13  ;;  %v3492_v24 = vpop.f32.mrb[63].mxu0  ;;  %v1992_v25 = vpop.f32.mrb[62].mxu1 }
 0x175   : > { %v3528_v28 = vpop.f32.mrb[63].mxu1 }
 0x176   : > { %v2029_v16 = vadd.f32 %v1992_v25, %v1860_v0 }
 0x179   : > { %v1828_v63 = vpop.f32.mrb[64].mxu0 }
 0x17a   : > { %v1861_v18 = vadd.f32 %v1828_v63, %v1616_v26  ;;  %v3495_v23 = vpop.f32.mrb[65].mxu0  ;;  %v1997_v33 = vpop.f32.mrb[64].mxu1 }
 0x17b   : > { %v1831_v34 = vpop.f32.mrb[66].mxu0  ;;  %v3531_v14 = vpop.f32.mrb[65].mxu1 }
 0x17c   : > { %v1862_v35 = vadd.f32 %v1831_v34, %v1617_v32  ;;  %v2030_v36 = vadd.f32 %v1997_v33, %v1861_v18  ;;  %v3496_v20 = vpop.f32.mrb[67].mxu0  ;;  %v2000_v39 = vpop.f32.mrb[66].mxu1 }
 0x17d   : > { %v3532_v42 = vpop.f32.mrb[67].mxu1 }
 0x17e   : > { %v2031_v27 = vadd.f32 %v2000_v39, %v1862_v35 }
 0x181   : > { %v1836_v43 = vpop.f32.mrb[68].mxu0 }
 0x182   : > { %v1863_v47 = vadd.f32 %v1836_v43, %v1618_v55  ;;  %v3499_v22 = vpop.f32.mrb[69].mxu0  ;;  %v2005_v49 = vpop.f32.mrb[68].mxu1 }
 0x183   : > { %v1839_v29 = vpop.f32.mrb[70].mxu0  ;;  %v3535_v50 = vpop.f32.mrb[69].mxu1 }
 0x184   : > { %v1864_v51 = vadd.f32 %v1839_v29, %v1619_v58  ;;  %v2032_v38 = vadd.f32 %v2005_v49, %v1863_v47  ;;  %v3500_v57 = vpop.f32.mrb[71].mxu0  ;;  %v2008_v26 = vpop.f32.mrb[70].mxu1 }
 0x185   : > { %v3536_v45 = vpop.f32.mrb[71].mxu1 }
 0x186   : > { %v2033_v31 = vadd.f32 %v2008_v26, %v1864_v51 }
 0x189   : > { %v1844_v48 = vpop.f32.mrb[72].mxu0 }
 0x18a   : > { %v1865_v60 = vadd.f32 %v1844_v48, %v1620_v54  ;;  %v3503_v32 = vpop.f32.mrb[73].mxu0  ;;  %v2013_v52 = vpop.f32.mrb[72].mxu1 }
 0x18b   : > { %v1847_v62 = vpop.f32.mrb[74].mxu0  ;;  %v3539_v40 = vpop.f32.mrb[73].mxu1 }
 0x18c   : > { %v1866_v59 = vadd.f32 %v1847_v62, %v1621_v30  ;;  %v2034_v41 = vadd.f32 %v2013_v52, %v1865_v60  ;;  %v3504_v2 = vpop.f32.mrb[75].mxu0  ;;  %v2016_v55 = vpop.f32.mrb[74].mxu1  ;;  %v3081_v30 = vld [vmem:[%s4791_s4] ss:$0 sm:$0xff] }
 0x18d   : > { %v3540_v3 = vpop.f32.mrb[75].mxu1 }
 0x18e   : > { %v2035_v37 = vadd.f32 %v2016_v55, %v1866_v59 }
 0x191   : > { %v1852_v44 = vpop.f32.mrb[76].mxu0 }
 0x192   : > { %v1867_v7 = vadd.f32 %v1852_v44, %v1622_v11  ;;  %v3507_v58 = vpop.f32.mrb[77].mxu0  ;;  %v2021_v8 = vpop.f32.mrb[76].mxu1 }
 0x193   : > { %v1855_v4 = vpop.f32.mrb[78].mxu0  ;;  %v3543_v9 = vpop.f32.mrb[77].mxu1 }
 0x194   : > { %v1868_v10 = vadd.f32 %v1855_v4, %v1623_v12  ;;  %v2036_v56 = vadd.f32 %v2021_v8, %v1867_v7  ;;  %v3508_v46 = vpop.f32.mrb[79].mxu0  ;;  %v2024_v54 = vpop.f32.mrb[78].mxu1  ;;  %v3785_v9 = vld [vmem:[%s4794_s7] sm:$0xff]  }
 0x195   : > { %v3544_v53 = vpop.f32.mrb[79].mxu1  ;;  %3618 = vmatpush3.bf16.msra.mxu0 %v3785_v9  ;;  %v3788_v46 = vld [vmem:[%s4794_s7 + $0x18] sm:$0xff]  }
 0x196   : > { %v2037_v5 = vadd.f32 %v2024_v54, %v1868_v10  ;;  %3619 = vmatprep.subr.bf16.mxu0 %v3813_v1  ;;  %v3786_v10 = vld [vmem:[%s4794_s7 + $0x8] sm:$0xff]   ;;  %v3789_v54 = vld [vmem:[%s4794_s7 + $0x20] sm:$0xff]  }
 0x197   : > { %v3790_v53 = vld [vmem:[%s4794_s7 + $0x28] sm:$0xff]  }
 0x199   : > { %v2180_v17 = vpop.f32.mrb[80].mxu0  ;;  %3620 = vmatpush3.bf16.msra.mxu0 %v3786_v10 }
 0x19a   : > { %v2219_v13 = vadd.f32 %v2180_v17, %v2028_v21  ;;  %v3563_v15 = vpop.f32.mrb[81].mxu0  ;;  %3621 = vmatprep.subr.bf16.mxu0 %v3813_v1  ;;  %v3792_v17 = vld [vmem:[%s4794_s7 + $0x38] sm:$0xff]  }
 0x19b   : > { %v2183_v19 = vpop.f32.mrb[82].mxu0  ;;  %v3795_v15 = vld [vmem:[%s4796_s9 + $0x10] sm:$0xff]  }
 0x19c   : > { %v2236_v6 = vadd.f32 %v3081_v30, %v2219_v13  ;;  %v2220_v11 = vadd.f32 %v2183_v19, %v2029_v16  ;;  %v3564_v61 = vpop.f32.mrb[83].mxu0  ;;  %v3794_v13 = vld [vmem:[%s4796_s9 + $0x8] sm:$0xff]   ;;  %v3796_v19 = vld [vmem:[%s4796_s9 + $0x18] sm:$0xff]  }
 0x19d   : > { %v3799_v61 = vld [vmem:[%s4796_s9 + $0x30] sm:$0xff]  }
 0x19e   : > { %v2237_v0 = vadd.f32 %v3081_v30, %v2220_v11  ;;  %v2246_v24 = vmax.f32 %v2236_v6, 0.0  ;;  %v3797_v6 = vld [vmem:[%s4796_s9 + $0x20] sm:$0xff]   ;;  %v3798_v11 = vld [vmem:[%s4796_s9 + $0x28] sm:$0xff]  }
 0x1a0   : > { %v2247_v25 = vmax.f32 %v2237_v0, 0.0 }
 0x1a1   : > { %v2188_v12 = vpop.f32.mrb[84].mxu0 }
 0x1a2   : > { %v2256_v28 = vpack.c.bf16 %v2247_v25, %v2246_v24  ;;  %v2221_v63 = vadd.f32 %v2188_v12, %v2030_v36  ;;  %v3567_v18 = vpop.f32.mrb[85].mxu0 }
 0x1a3   : > { %v2191_v23 = vpop.f32.mrb[86].mxu0 }
 0x1a4   : > { %v2238_v33 = vadd.f32 %v3081_v30, %v2221_v63  ;;  %v2222_v34 = vadd.f32 %v2191_v23, %v2031_v27  ;;  %v3568_v14 = vpop.f32.mrb[87].mxu0  ;;  %3598 = vmatmul.mubr.bf16.vlgmr.msra.gmra.mrb[80].mxu1 %v2256_v28  ;;  %v3082_v28 = vld [vmem:[%s4793_s6] ss:$0 sm:$0xff] }
 0x1a5   : > { %3601 = vmatprep.mubr.msk.bf16.mxu1 %vm3814_vm0, %v3813_v1 }
 0x1a6   : > { %v2239_v21 = vadd.f32 %v3081_v30, %v2222_v34  ;;  %v2248_v35 = vmax.f32 %v2238_v33, 0.0 }
 0x1a8   : > { %v2249_v20 = vmax.f32 %v2239_v21, 0.0 }
 0x1a9   : > { %v2196_v16 = vpop.f32.mrb[88].mxu0 }
 0x1aa   : > { %v2223_v39 = vadd.f32 %v2196_v16, %v2032_v38  ;;  %v3571_v42 = vpop.f32.mrb[89].mxu0  ;;  %v2257_v43 = vpack.c.bf16 %v2249_v20, %v2248_v35 }
 0x1ab   : > { %v2199_v47 = vpop.f32.mrb[90].mxu0 }
 0x1ac   : > { %v2240_v22 = vadd.f32 %v3081_v30, %v2223_v39  ;;  %v2224_v49 = vadd.f32 %v2199_v47, %v2033_v31  ;;  %v3572_v36 = vpop.f32.mrb[91].mxu0  ;;  %3602 = vmatmul.mubr.bf16.gmra.mrb[84].mxu1 %v2257_v43  ;;  %v2438_v43 = vpop.permute.xlu1 %2437 }
 0x1ad   : > { %3605 = vmatprep.mubr.msk.bf16.mxu1 %vm3814_vm0, %v3813_v1 }
 0x1ae   : > { %v2241_v27 = vadd.f32 %v3081_v30, %v2224_v49  ;;  %v2250_v29 = vmax.f32 %v2240_v22, 0.0 }
 0x1b0   : > { %v2251_v50 = vmax.f32 %v2241_v27, 0.0 }
 0x1b1   : > { %v2204_v51 = vpop.f32.mrb[92].mxu0 }
 0x1b2   : > { %v2225_v57 = vadd.f32 %v2204_v51, %v2034_v41  ;;  %v3575_v26 = vpop.f32.mrb[93].mxu0  ;;  %v2258_v45 = vpack.c.bf16 %v2251_v50, %v2250_v29 }
 0x1b3   : > { %v2207_v48 = vpop.f32.mrb[94].mxu0 }
 0x1b4   : > { %v2242_v60 = vadd.f32 %v3081_v30, %v2225_v57  ;;  %v2226_v38 = vadd.f32 %v2207_v48, %v2035_v37  ;;  %v3576_v32 = vpop.f32.mrb[95].mxu0  ;;  %3606 = vmatmul.mubr.bf16.gmra.mrb[88].mxu1 %v2258_v45 }
 0x1b5   : > { %3609 = vmatprep.mubr.msk.bf16.mxu1 %vm3814_vm0, %v3813_v1 }
 0x1b6   : > { %v2243_v31 = vadd.f32 %v3081_v30, %v2226_v38  ;;  %v2252_v52 = vmax.f32 %v2242_v60, 0.0  ;;  %v2443_v60 = vpop.permute.xlu1 %2442 }
 0x1b8   : > { %v2253_v62 = vmax.f32 %v2243_v31, 0.0 }
 0x1b9   : > { %v2212_v40 = vpop.f32.mrb[96].mxu0 }
 0x1ba   : > { %v2227_v59 = vadd.f32 %v2212_v40, %v2036_v56  ;;  %v3579_v2 = vpop.f32.mrb[97].mxu0  ;;  %v2259_v55 = vpack.c.bf16 %v2253_v62, %v2252_v52  ;;  %v3787_v56 = vld [vmem:[%s4794_s7 + $0x10] sm:$0xff]  }
 0x1bb   : > { %v2215_v3 = vpop.f32.mrb[98].mxu0  ;;  %3622 = vmatpush3.bf16.msra.mxu0 %v3787_v56 }
 0x1bc   : > { %v2244_v44 = vadd.f32 %v3081_v30, %v2227_v59  ;;  %v2228_v41 = vadd.f32 %v2215_v3, %v2037_v5  ;;  %v3580_v7 = vpop.f32.mrb[99].mxu0  ;;  %3610 = vmatmul.mubr.bf16.gmra.mrb[92].mxu1 %v2259_v55  ;;  %3623 = vmatprep.subr.bf16.mxu0 %v3813_v1  ;;  %v3791_v5 = vld [vmem:[%s4794_s7 + $0x30] sm:$0xff]   ;;  %v2428_v63 = vpop.permute.xlu0 %2427 }
 0x1bd   : > { %3613 = vmatprep.mubr.msk.bf16.mxu1 %vm3814_vm0, %v3813_v1  ;;  %v2453_v3 = vpop.permute.xlu1 %2452 }
 0x1be   : > { %v2245_v37 = vadd.f32 %v3081_v30, %v2228_v41  ;;  %v2254_v58 = vmax.f32 %v2244_v44, 0.0  ;;  %v3793_v30 = vld [vmem:[%s4796_s9] sm:$0xff]  }
 0x1bf   : > { %3624 = vmatpush3.bf16.msra.mxu0 %v3788_v46  ;;  %3638 = vmatpush3.bf16.msra.mxu1 %v3793_v30 }
 0x1c0   : > { %v2255_v8 = vmax.f32 %v2245_v37, 0.0  ;;  %3625 = vmatprep.subr.bf16.mxu0 %v3813_v1  ;;  %3639 = vmatprep.subr.bf16.mxu1 %v3813_v1 }
 0x1c1   : > { %v2463_v46 = vpop.permute.xlu1 %2462 }
 0x1c2   : > { %v2260_v4 = vpack.c.bf16 %v2255_v8, %v2254_v58 }
 0x1c3   : > { %3626 = vmatpush3.bf16.msra.mxu0 %v3789_v54  ;;  %3640 = vmatpush3.bf16.msra.mxu1 %v3794_v13 }
 0x1c4   : > { %3614 = vmatmul.mubr.bf16.gmra.mrb[96].mxu1 %v2260_v4  ;;  %3627 = vmatprep.subr.bf16.mxu0 %v3813_v1  ;;  %v2433_v20 = vpop.permute.xlu0 %2432 }
 0x1c5   : > { %3653 = vmatprep.mubr.msk.bf16.mxu1 %vm3814_vm0, %v3813_v1  ;;  %3641 = vmatprep.subr.bf16.mxu1 %v3813_v1 }
 0x1c7   : > { %3628 = vmatpush3.bf16.msra.mxu0 %v3790_v53  ;;  %3642 = vmatpush3.bf16.msra.mxu1 %v3795_v15 }
 0x1c8   : > { %3629 = vmatprep.subr.bf16.mxu0 %v3813_v1  ;;  %3643 = vmatprep.subr.bf16.mxu1 %v3813_v1  ;;  %v2448_v31 = vpop.permute.xlu0 %2447 }
 0x1cb   : > { %3630 = vmatpush3.bf16.msra.mxu0 %v3791_v5  ;;  %3644 = vmatpush3.bf16.msra.mxu1 %v3796_v19 }
 0x1cc   : > { %3631 = vmatprep.subr.bf16.mxu0 %v3813_v1  ;;  %3645 = vmatprep.subr.bf16.mxu1 %v3813_v1  ;;  %v2458_v4 = vpop.permute.xlu0 %2457 }
 0x1cf   : > { %3632 = vmatpush3.bf16.msra.mxu0 %v3792_v17  ;;  %3646 = vmatpush3.bf16.msra.mxu1 %v3797_v6 }
 0x1d0   : > { %3647 = vmatprep.subr.bf16.mxu1 %v3813_v1 }
 0x1d3   : > { %3648 = vmatpush3.bf16.msra.mxu1 %v3798_v11  ;;  %v2468_v11 = vpop.permute.xlu0 %2467 }
 0x1d4   : > { %3649 = vmatprep.subr.bf16.mxu1 %v3813_v1 }
 0x1d7   : > { %3650 = vmatpush3.bf16.msra.mxu1 %v3799_v61 }
 0x1d8   : > { %3651 = vmatprep.subr.bf16.mxu1 %v3813_v1 }
 0x277   : > { %v2366_v0 = vpop.f32.mrb[80].mxu1 }
 0x278   : > { %v3599_v24 = vpop.f32.mrb[81].mxu1  ;;  %v4696_v33 = vadd.f32 %v3082_v28, %v2366_v0 }
 0x279   : > { %v2369_v25 = vpop.f32.mrb[82].mxu1 }
 0x27a   : > { %v3600_v12 = vpop.f32.mrb[83].mxu1  ;;  %v4694_v18 = vadd.f32 %v3082_v28, %v2369_v25  ;;  %v2405_v16 = vmax.f32 %v4696_v33, 0.0  ;;  %v2473_v25 = vpop.permute.xlu1 %2472 }
 0x27c   : > { %v2406_v1 = vmax.f32 %v4694_v18, 0.0  ;;  %v2475_v49 = vmul.f32 %v2428_v63, %v2405_v16 }
 0x27e   : > { %v2476_v47 = vmul.f32 %v2433_v20, %v2406_v1 }
 0x27f   : > { %v2374_v23 = vpop.f32.mrb[84].mxu1 }
 0x280   : > { %v4698_v34 = vadd.f32 %v3082_v28, %v2374_v23  ;;  %v3603_v14 = vpop.f32.mrb[85].mxu1  ;;  %v2485_v57 = vadd.f32 %v2476_v47, %v2475_v49  ;;  %v3800_v49 = vld [vmem:[%s4796_s9 + $0x38] sm:$0xff]  }
 0x281   : > { %v2377_v21 = vpop.f32.mrb[86].mxu1  ;;  %3652 = vmatpush3.bf16.msra.mxu1 %v3800_v49 }
 0x282   : > { %v3604_v35 = vpop.f32.mrb[87].mxu1  ;;  %v2407_v39 = vmax.f32 %v4698_v34, 0.0  ;;  %v4703_v42 = vadd.f32 %v3082_v28, %v2377_v21 }
 0x284   : > { %v2477_v36 = vmul.f32 %v2438_v43, %v2407_v39  ;;  %v2408_v27 = vmax.f32 %v4703_v42, 0.0 }
 0x286   : > { %v2478_v38 = vmul.f32 %v2443_v60, %v2408_v27  ;;  %v2486_v32 = vadd.f32 %v2485_v57, %v2477_v36  ;;  %v2518_v36 = vld [vmem:[%s4795_s8] sm:$0x1] }
 0x287   : > { %v2382_v22 = vpop.f32.mrb[88].mxu1 }
 0x288   : > { %v4712_v29 = vadd.f32 %v3082_v28, %v2382_v22  ;;  %v3607_v50 = vpop.f32.mrb[89].mxu1  ;;  %v2487_v59 = vadd.f32 %v2486_v32, %v2478_v38 }
 0x289   : > { %v2385_v51 = vpop.f32.mrb[90].mxu1 }
 0x28a   : > { %v2409_v26 = vmax.f32 %v4712_v29, 0.0  ;;  %v4715_v45 = vadd.f32 %v3082_v28, %v2385_v51  ;;  %v3608_v48 = vpop.f32.mrb[91].mxu1 }
 0x28c   : > { %v2479_v52 = vmul.f32 %v2448_v31, %v2409_v26  ;;  %v2410_v62 = vmax.f32 %v4715_v45, 0.0  ;;  %v2625_v31 = vld [vmem:[%s4797_s10] sm:$0x1] }
 0x28e   : > { %v2488_v41 = vadd.f32 %v2487_v59, %v2479_v52  ;;  %v2480_v7 = vmul.f32 %v2453_v3, %v2410_v62 }
 0x28f   : > { %v2390_v40 = vpop.f32.mrb[92].mxu1 }
 0x290   : > { %v4722_v2 = vadd.f32 %v3082_v28, %v2390_v40  ;;  %v3611_v55 = vpop.f32.mrb[93].mxu1  ;;  %v2489_v56 = vadd.f32 %v2488_v41, %v2480_v7 }
 0x291   : > { %v2393_v44 = vpop.f32.mrb[94].mxu1 }
 0x292   : > { %v2411_v37 = vmax.f32 %v4722_v2, 0.0  ;;  %v4727_v58 = vadd.f32 %v3082_v28, %v2393_v44  ;;  %v3612_v8 = vpop.f32.mrb[95].mxu1 }
 0x294   : > { %v2481_v9 = vmul.f32 %v2458_v4, %v2411_v37  ;;  %v2412_v10 = vmax.f32 %v4727_v58, 0.0  ;;  %v2719_v4 = vlaneseq }
 0x296   : > { %v2490_v53 = vadd.f32 %v2489_v56, %v2481_v9  ;;  %v2482_v5 = vmul.f32 %v2463_v46, %v2412_v10  ;;  %v2720_v9 = vshrl.u32 %v2719_v4, 7 }
 0x297   : > { %v2398_v54 = vpop.f32.mrb[96].mxu1 }
 0x298   : > { %v4734_v17 = vadd.f32 %v3082_v28, %v2398_v54  ;;  %v3615_v30 = vpop.f32.mrb[97].mxu1  ;;  %v2491_v61 = vadd.f32 %v2490_v53, %v2482_v5  ;;  %v2721_v56 = vsub.s32 0, %v2720_v9  ;;  %v2733_v53 = vld [vmem:[%s401_s13] sm:$0xff]  ;;  %v2734_v5 = vld [vmem:[%s401_s13 + $0x8] sm:$0xff] }
 0x299   : > { %v2401_v13 = vpop.f32.mrb[98].mxu1  ;;  %v2735_v30 = vld [vmem:[%s401_s13 + $0x10] sm:$0xff] }
 0x29a   : > { %v2413_v15 = vmax.f32 %v4734_v17, 0.0  ;;  %v4737_v19 = vadd.f32 %v3082_v28, %v2401_v13  ;;  %v3616_v6 = vpop.f32.mrb[99].mxu1  ;;  %v2736_v13 = vld [vmem:[%s401_s13 + $0x18] sm:$0xff] }
 0x29c   : > { %v2483_v0 = vmul.f32 %v2468_v11, %v2413_v15  ;;  %v2414_v24 = vmax.f32 %v4737_v19, 0.0 }
 0x29e   : > { %v2492_v12 = vadd.f32 %v2491_v61, %v2483_v0  ;;  %v2484_v63 = vmul.f32 %v2473_v25, %v2414_v24  ;;  %v2737_v25 = vld [vmem:[%s401_s13 + $0x20] sm:$0xff] }
 0x2a0   : > { %v2493_v23 = vadd.f32 %v2492_v12, %v2484_v63  ;;  %v2738_v12 = vld [vmem:[%s401_s13 + $0x28] sm:$0xff]  ;;  %v2739_v63 = vld [vmem:[%s401_s13 + $0x30] sm:$0xff] }
 0x2a2   : > { %v2494_v14 = vrot.slane %v2493_v23, 4 }
 0x2a4   : > { %v2495_v21 = vadd.f32 %v2494_v14, %v2493_v23 }
 0x2a6   : > { %v2496_v35 = vrot.slane %v2495_v21, 2 }
 0x2a8   : > { %v2497_v20 = vadd.f32 %v2496_v35, %v2495_v21 }
 0x2aa   : > { %v2498_v28 = vrot.slane %v2497_v20, 1 }
 0x2ac   : > { %v2499_v43 = vadd.f32 %v2498_v28, %v2497_v20 }
 0x2ae   : > { %v2500_v47 = vmul.f32 0.015625, %v2499_v43 }
 0x2b0   : > { %v2501_v22 = vpack.c.bf16 %v2500_v47, %v2500_v47 }
 0x2b2   : > { %3634 = vmatmul.mubr.bf16.vlgmr.msra.gmra.mrb[100].mxu0 %v2501_v22 }
 0x385   : > { %v2601_v50 = vpop.f32.mrb[100].mxu0 }
 0x386   : > { %v2602_v51 = vadd.f32 %v2601_v50, %v2518_v36  ;;  %v3635_v57 = vpop.f32.mrb[101].mxu0 }
 0x387   : > { %v2604_v48 = vpop.f32.mrb[102].mxu0 }
 0x388   : > { %v2607_v60 = vmax.f32 %v2602_v51, 0.0  ;;  %v3636_v38 = vpop.f32.mrb[103].mxu0 }
 0x38a   : > { %v2608_v32 = vpack.c.bf16 %v2607_v60, %v2607_v60 }
 0x38c   : > { %3654 = vmatmul.mubr.bf16.vlgmr.msra.gmra.mrb[100].mxu1 %v2608_v32 }
 0x45f   : > { %v2708_v52 = vpop.f32.mrb[100].mxu1 }
 0x460   : > { %v2709_v40 = vadd.f32 %v2708_v52, %v2625_v31  ;;  %v3655_v59 = vpop.f32.mrb[101].mxu1 }
 0x461   : > { %v2711_v55 = vpop.f32.mrb[102].mxu1 }
 0x462   : > { %v2714_v3 = vsub.f32 0.0, %v2709_v40  ;;  %v3656_v44 = vpop.f32.mrb[103].mxu1 }
 0x464   : > { %v2715_v41 = vmul.f32 1.442695, %v2714_v3 }
 0x466   : > { %3801 = vpow2.f32 %v2715_v41 }
 0x470   : > { %v3802_v7 = vpop.eup %3801 }
 0x471   : > { %v2717_v8 = vadd.f32 1.0, %v3802_v7 }
 0x473   : > { %3803 = vrcp.f32 %v2717_v8 }
 0x47d   : > { %v3804_v46 = vpop.eup %3803 }
 0x47e   : > { %v2722_v54 = vrot.slane %v3804_v46, %v2721_v56 }
 0x480   : > { %v2723_v6 = vmul.f32 %v2722_v54, %v2405_v16  ;;  %v2724_v11 = vmul.f32 %v2722_v54, %v2406_v1  ;;  %v2725_v61 = vmul.f32 %v2722_v54, %v2407_v39  ;;  %v2726_v0 = vmul.f32 %v2722_v54, %v2408_v27  ;;  %v2740_v1 = vld [vmem:[%s401_s13 + $0x38] sm:$0xff]  ;;  %v2741_v16 = vld [vmem:[%s401_s13 + $0x40] sm:$0xff]  ;;  %v2742_v39 = vld [vmem:[%s401_s13 + $0x48] sm:$0xff] }
 0x481   : > { %v2727_v23 = vmul.f32 %v2722_v54, %v2409_v26  ;;  %v2728_v33 = vmul.f32 %v2722_v54, %v2410_v62  ;;  %v2729_v18 = vmul.f32 %v2722_v54, %v2411_v37  ;;  %v2730_v34 = vmul.f32 %v2722_v54, %v2412_v10 }
 0x482   : > { %v2731_v42 = vmul.f32 %v2722_v54, %v2413_v15  ;;  %v2732_v27 = vmul.f32 %v2722_v54, %v2414_v24  ;;  %v2743_v29 = vadd.f32 %v2733_v53, %v2723_v6  ;;  %v2744_v26 = vadd.f32 %v2734_v5, %v2724_v11 }
 0x483   : > { %v2745_v14 = vadd.f32 %v2735_v30, %v2725_v61  ;;  %v2746_v45 = vadd.f32 %v2736_v13, %v2726_v0  ;;  %v2747_v62 = vadd.f32 %v2737_v25, %v2727_v23  ;;  %v2748_v21 = vadd.f32 %v2738_v12, %v2728_v33 }
 0x484   : > { %v2749_v2 = vadd.f32 %v2739_v63, %v2729_v18  ;;  %v2750_v37 = vadd.f32 %v2740_v1, %v2730_v34  ;;  %v2751_v58 = vadd.f32 %v2741_v16, %v2731_v42  ;;  %v2752_v10 = vadd.f32 %v2742_v39, %v2732_v27 }
 0x485   : > { %v2753_v17 = vmax.f32 %v2743_v29, 0.0  ;;  %v2754_v15 = vmax.f32 %v2744_v26, 0.0  ;;  %v2755_v35 = vmax.f32 %v2745_v14, 0.0  ;;  %v2756_v19 = vmax.f32 %v2746_v45, 0.0 }
 0x486   : > { %v2757_v24 = vmax.f32 %v2747_v62, 0.0  ;;  %v2758_v20 = vmax.f32 %v2748_v21, 0.0  ;;  %v2759_v28 = vmax.f32 %v2749_v2, 0.0  ;;  %v2760_v43 = vmax.f32 %v2750_v37, 0.0 }
 0x487   : > { %v2761_v47 = vmax.f32 %v2751_v58, 0.0  ;;  %v2762_v22 = vmax.f32 %v2752_v10, 0.0  ;;  %2763 = vst [vmem:[%s406_s16] sm:$0xff] %v2753_v17  ;;  %2764 = vst [vmem:[%s406_s16 + $0x8] sm:$0xff] %v2754_v15 }
 0x488   : > { %2765 = vst [vmem:[%s406_s16 + $0x10] sm:$0xff] %v2755_v35  ;;  %2766 = vst [vmem:[%s406_s16 + $0x18] sm:$0xff] %v2756_v19 }
 0x489   : > { %2767 = vst [vmem:[%s406_s16 + $0x20] sm:$0xff] %v2757_v24  ;;  %2768 = vst [vmem:[%s406_s16 + $0x28] sm:$0xff] %v2758_v20 }
 0x48a   : > { %2769 = vst [vmem:[%s406_s16 + $0x30] sm:$0xff] %v2759_v28  ;;  %2770 = vst [vmem:[%s406_s16 + $0x38] sm:$0xff] %v2760_v43 }
 0x48b   : > { %2771 = vst [vmem:[%s406_s16 + $0x40] sm:$0xff] %v2761_v47  ;;  %2772 = vst [vmem:[%s406_s16 + $0x48] sm:$0xff] %v2762_v22 }
 0x48c PF: > { %s21_s17 = sadd.s32 1, %s3811_s17  }
 0x48d   : > { %p18_p4 = scmp.ge.s32.totalorder %s21_s17, 4  }
 0x48f   :  { %20 = sbr.rel (!%p18_p4) target bundleno = 1 (0x1), region = 105 }

</bundles_post_ra>
